<compile_context>
chip_gen: v7x
topology: tpu7x:2x2x1
jax: 0.10.0
libtpu: 0.0.40
codegen_flags: <defaults>
</compile_context>

<pallas_src>
import functools

import numpy as np

import jax
import jax.numpy as jnp
from jax.experimental import pallas as pl
from jax.experimental.pallas import tpu as pltpu

BN_EPS = 1e-5


# ----------------------------------------------------------------------------
# Fused kernel: feature prep + selector MLP + width resize + blend + expectation
# ----------------------------------------------------------------------------
def _fused_comp_kernel(need_resize,
                       pose_ref, mvd_ref, dmono_ref,
                       w1p_ref, w1mv_ref, w1mo_ref, b1_ref,
                       w2_ref, b2_ref, w3d_ref, b3d_ref, dvals_ref,
                       pmv_ref, pmono_ref, *rest):
    if need_resize:
        interp_ref, cw_ref, pcomp_ref, dcomp_ref, pmono_out_ref = rest
    else:
        cw_ref, pcomp_ref, dcomp_ref = rest

    # ---- selector features (fused: means + implicit concat via split W1) ---
    mv_pred = jnp.mean(mvd_ref[...], axis=-1, keepdims=True)       # (N, 1)
    mono_pred = jnp.mean(dmono_ref[...], axis=-1, keepdims=True)   # (N, 1)

    # ---- selector MLP (BatchNorm folded offline into the Linear weights) ---
    h = (jnp.dot(pose_ref[...], w1p_ref[...],
                 preferred_element_type=jnp.float32)
         + mv_pred * w1mv_ref[...] + mono_pred * w1mo_ref[...] + b1_ref[...])
    h = jnp.maximum(h, 0.0)
    h = jnp.dot(h, w2_ref[...], preferred_element_type=jnp.float32) + b2_ref[...]
    h = jnp.maximum(h, 0.0)
    # nW == 2:  softmax([l0, l1])[0] == sigmoid(l0 - l1)
    logit_diff = (jnp.dot(h, w3d_ref[...], preferred_element_type=jnp.float32)
                  + b3d_ref[...])                                   # (N, 1)
    w_mv = 1.0 / (1.0 + jnp.exp(-logit_diff))                       # (N, 1)
    cw_ref[:, 0:1] = w_mv
    cw_ref[:, 1:2] = 1.0 - w_mv

    # ---- mono volume: fused width resize (linear interp as MXU matmul) -----
    pmv = pmv_ref[...].astype(jnp.float32)                          # (N, tf, D)
    n, tf, _ = pmv.shape
    if need_resize:
        a = interp_ref[...]                                         # (tf, Wsrc)
        pmono_full = pmono_ref[...].astype(jnp.float32)             # (N, Wsrc, D)
        a3 = jnp.broadcast_to(a[None], (n, tf, a.shape[-1]))
        pmono_t = jax.lax.dot_general(
            a3, pmono_full,
            dimension_numbers=(((2,), (1,)), ((0,), (0,))),
            preferred_element_type=jnp.float32)                     # (N, tf, D)
        pmono_out_ref[...] = pmono_t.astype(pmono_out_ref.dtype)
    else:
        pmono_t = pmono_ref[...].astype(jnp.float32)                # (N, tf, D)

    # ---- composition blend: one broadcast + FMA per element ----------------
    w_mv_b = w_mv[:, :, None]                                       # (N, 1, 1)
    pc = pmono_t + w_mv_b * (pmv - pmono_t)
    pcomp_ref[...] = pc.astype(pcomp_ref.dtype)

    # ---- depth expectation: lane reduce (XLU) -> lane-dense (N, tf) --------
    dcomp_ref[...] = jnp.sum(pc * dvals_ref[...], axis=-1)


# ----------------------------------------------------------------------------
# Helpers: width-resize interpolation matrix, fW tiling choice.
# ----------------------------------------------------------------------------
def _linear_resize_matrix(dst_w, src_w):
    """Row-stochastic linear-interp matrix (half-pixel centers), (dst_w, src_w)."""
    # TODO(synk): torchvision TF.resize applies antialias when *down*sampling;
    # this matrix reproduces plain bilinear (exact for upsampling).
    a = np.zeros((dst_w, src_w), np.float32)
    scale = src_w / dst_w
    for f in range(dst_w):
        c = (f + 0.5) * scale - 0.5
        c = min(max(c, 0.0), src_w - 1.0)
        lo = int(np.floor(c))
        hi = min(lo + 1, src_w - 1)
        t = c - lo
        a[f, lo] += 1.0 - t
        a[f, hi] += t
    return a


def _pick_tile_fw(fw, max_tile):
    """Largest fW tile <= max_tile.  Tiles (< fw) must be multiples of 128 so the
    (N, tile_fw) d_comp output block stays lane-aligned."""
    if fw <= max_tile:
        return fw
    t = (max_tile // 128) * 128
    while t >= 128:
        if fw % t == 0:
            return t
        t -= 128
    return fw


# ----------------------------------------------------------------------------
# pallas_call wrapper
# ----------------------------------------------------------------------------
def fused_comp_forward(sp, pose, mv_d, d_mono, prob_mv, prob_mono, d_vals,
                       *, tile_fw_max=512):
    n, fw, d_bins = prob_mv.shape
    w_src = prob_mono.shape[1]
    need_resize = int(w_src) != int(fw)
    tile_fw = _pick_tile_fw(fw, tile_fw_max)
    num_tiles = fw // tile_fw
    c = sp["w2"].shape[0]
    p_dim = pose.shape[1]
    vol_dtype = prob_mv.dtype

    c2 = lambda i: (0, 0)
    c3 = lambda i: (0, 0, 0)

    in_specs = [
        pl.BlockSpec(pose.shape, c2),
        pl.BlockSpec(mv_d.shape, c2),
        pl.BlockSpec(d_mono.shape, c2),
        pl.BlockSpec(sp["w1_pose"].shape, c2),
        pl.BlockSpec(sp["w1_mv"].shape, c2),
        pl.BlockSpec(sp["w1_mono"].shape, c2),
        pl.BlockSpec(sp["b1"].shape, c2),
        pl.BlockSpec(sp["w2"].shape, c2),
        pl.BlockSpec(sp["b2"].shape, c2),
        pl.BlockSpec(sp["w3_diff"].shape, c2),
        pl.BlockSpec(sp["b3_diff"].shape, c2),
        pl.BlockSpec(d_vals.shape, c3),
        pl.BlockSpec((n, tile_fw, d_bins), lambda i: (0, i, 0)),     # prob_mv
    ]
    inputs = [pose, mv_d, d_mono,
              sp["w1_pose"], sp["w1_mv"], sp["w1_mono"], sp["b1"],
              sp["w2"], sp["b2"], sp["w3_diff"], sp["b3_diff"],
              d_vals, prob_mv]

    if need_resize:
        interp = jnp.asarray(_linear_resize_matrix(fw, w_src))
        in_specs += [pl.BlockSpec((n, w_src, d_bins), c3),            # full mono
                     pl.BlockSpec((tile_fw, w_src), lambda i: (i, 0))]
        inputs += [prob_mono, interp]
    else:
        in_specs += [pl.BlockSpec((n, tile_fw, d_bins), lambda i: (0, i, 0))]
        inputs += [prob_mono]

    out_shape = [
        jax.ShapeDtypeStruct((n, 2), jnp.float32),                    # comp_w
        jax.ShapeDtypeStruct((n, fw, d_bins), vol_dtype),             # prob_comp
        jax.ShapeDtypeStruct((n, fw), jnp.float32),                   # d_comp
    ]
    out_specs = [
        pl.BlockSpec((n, 2), c2),
        pl.BlockSpec((n, tile_fw, d_bins), lambda i: (0, i, 0)),
        pl.BlockSpec((n, tile_fw), lambda i: (0, i)),
    ]
    if need_resize:
        out_shape.append(jax.ShapeDtypeStruct((n, fw, d_bins), vol_dtype))
        out_specs.append(pl.BlockSpec((n, tile_fw, d_bins), lambda i: (0, i, 0)))

    itemsize = jnp.dtype(vol_dtype).itemsize
    flops = (4 * n * fw * d_bins
             + (2 * n * fw * w_src * d_bins if need_resize else 0)
             + 2 * n * (p_dim * c + c * c + c) * num_tiles)
    bytes_accessed = (itemsize * (n * fw * d_bins * (3 if need_resize else 2)
                                  + n * w_src * d_bins)
                      + 4 * (n * fw + n * fw + n * w_src + 2 * n))
    cost = pl.CostEstimate(flops=int(flops), transcendentals=int(n * num_tiles),
                           bytes_accessed=int(bytes_accessed))

    outs = pl.pallas_call(
        functools.partial(_fused_comp_kernel, need_resize),
        grid=(num_tiles,),
        in_specs=in_specs,
        out_specs=out_specs,
        out_shape=out_shape,
        compiler_params=pltpu.CompilerParams(
            # comp_w's output block is revisited on every step -> keep the fW
            # axis "arbitrary".  TODO(synk): for v7x (2 TCs) at image-scale fW,
            # hoist comp_w into its own tiny call and mark this axis parallel.
            dimension_semantics=("arbitrary",)),
        cost_estimate=cost,
    )(*inputs)

    if need_resize:
        comp_w, prob_comp, d_comp, prob_mono_r = outs
    else:
        comp_w, prob_comp, d_comp = outs
        prob_mono_r = prob_mono                      # widths match: identity
    return comp_w, prob_comp, d_comp, prob_mono_r


# ----------------------------------------------------------------------------
# Parameter handling: synthetic init + offline BatchNorm folding / reshaping.
# ----------------------------------------------------------------------------
def init_selector_params(key, L=3, C=64, nW=2, use_pred=True):
    in_feat = L * 3 + 2 if use_pred else L * 3
    ks = jax.random.split(key, 14)
    return {
        "w1": 0.1 * jax.random.normal(ks[0], (in_feat, C), jnp.float32),
        "b1": 0.1 * jax.random.normal(ks[1], (1, C), jnp.float32),
        "g1": 1.0 + 0.1 * jax.random.normal(ks[2], (1, C), jnp.float32),
        "be1": 0.1 * jax.random.normal(ks[3], (1, C), jnp.float32),
        "m1": 0.1 * jax.random.normal(ks[4], (1, C), jnp.float32),
        "v1": jax.random.uniform(ks[5], (1, C), jnp.float32, 0.5, 1.5),
        "w2": 0.1 * jax.random.normal(ks[6], (C, C), jnp.float32),
        "b2": 0.1 * jax.random.normal(ks[7], (1, C), jnp.float32),
        "g2": 1.0 + 0.1 * jax.random.normal(ks[8], (1, C), jnp.float32),
        "be2": 0.1 * jax.random.normal(ks[9], (1, C), jnp.float32),
        "m2": 0.1 * jax.random.normal(ks[10], (1, C), jnp.float32),
        "v2": jax.random.uniform(ks[11], (1, C), jnp.float32, 0.5, 1.5),
        "w3": 0.1 * jax.random.normal(ks[12], (C, nW), jnp.float32),
        "b3": 0.1 * jax.random.normal(ks[13], (1, nW), jnp.float32),
    }


def prepare_selector_params(p, L=3):
    """Fold eval-mode BatchNorm into the Linear layers and split W1 for the
    fused feature prep (pose block / mv-pred column / mono-pred column)."""
    s1 = p["g1"] * jax.lax.rsqrt(p["v1"] + BN_EPS)   # (1, C)
    s2 = p["g2"] * jax.lax.rsqrt(p["v2"] + BN_EPS)   # (1, C)
    w1 = p["w1"] * s1
    b1 = (p["b1"] - p["m1"]) * s1 + p["be1"]
    w2 = p["w2"] * s2
    b2 = (p["b2"] - p["m2"]) * s2 + p["be2"]
    w3, b3 = p["w3"], p["b3"]
    pdim = L * 3
    return {
        "w1_pose": w1[:pdim], "w1_mv": w1[pdim:pdim + 1],
        "w1_mono": w1[pdim + 1:pdim + 2], "b1": b1,
        "w2": w2, "b2": b2,
        "w3_diff": w3[:, 0:1] - w3[:, 1:2],          # (C, 1)
        "b3_diff": b3[:, 0:1] - b3[:, 1:2],          # (1, 1)
    }


# ----------------------------------------------------------------------------
# comp_d_net forward (composition head). Sub-network outputs are inputs.
# ----------------------------------------------------------------------------
@functools.partial(jax.jit,
                   static_argnames=("d_min", "d_max", "d_hyp", "tile_fw_max"))
def comp_d_net_forward(sel_params, rel_pose, prob_mv, mv_d, prob_mono, d_mono,
                       d_min=0.1, d_max=15.0, d_hyp=-0.2, tile_fw_max=512):
    n, l, _ = rel_pose.shape
    fw, d_bins = prob_mv.shape[1], prob_mv.shape[2]

    pose_flat = rel_pose.reshape(n, l * 3).astype(jnp.float32)
    d_vals = (jnp.linspace(d_min ** d_hyp, d_max ** d_hyp, d_bins)
              ** (1.0 / d_hyp)).astype(jnp.float32).reshape(1, 1, d_bins)

    comp_w, prob_comp, d_comp, prob_mono_r = fused_comp_forward(
        sel_params, pose_flat, mv_d.astype(jnp.float32),
        d_mono.astype(jnp.float32), prob_mv, prob_mono, d_vals,
        tile_fw_max=tile_fw_max)

    return {
        "d_comp": d_comp,                          # (N, fW)
        "prob_comp": prob_comp,                    # (N, fW, D)
        "prob_mono": prob_mono_r[:, None],         # (N, 1, fW, D)  (resized)
        "comp_w": comp_w,                          # (N, 2)
        "mv_dict": {"prob": prob_mv, "d": mv_d},
        "mono_dict": {"d_mono": d_mono[:, None], "prob_mono": prob_mono[:, None]},
    }


# ----------------------------------------------------------------------------
# Pure-JAX reference (raw params, explicit BN, softmax, interp-matrix resize).
# ----------------------------------------------------------------------------
def _reference_forward(raw, rel_pose, prob_mv, mv_d, prob_mono, d_mono,
                       d_min=0.1, d_max=15.0, d_hyp=-0.2):
    n, l, _ = rel_pose.shape
    fw, d_bins = prob_mv.shape[1], prob_mv.shape[2]
    x = rel_pose.reshape(n, l * 3)
    x = jnp.concatenate(
        [x, jnp.stack([mv_d.mean(-1), d_mono.mean(-1)], axis=-1)], axis=-1)
    h = x @ raw["w1"] + raw["b1"]
    h = (h - raw["m1"]) * jax.lax.rsqrt(raw["v1"] + BN_EPS) * raw["g1"] + raw["be1"]
    h = jnp.maximum(h, 0.0)
    h = h @ raw["w2"] + raw["b2"]
    h = (h - raw["m2"]) * jax.lax.rsqrt(raw["v2"] + BN_EPS) * raw["g2"] + raw["be2"]
    h = jnp.maximum(h, 0.0)
    logits = h @ raw["w3"] + raw["b3"]
    cw = jax.nn.softmax(logits, axis=-1)
    a = jnp.asarray(_linear_resize_matrix(fw, prob_mono.shape[1]))
    pmono_r = jnp.einsum("fw,nwd->nfd", a, prob_mono)
    pc = cw[:, 0:1, None] * prob_mv + cw[:, 1:2, None] * pmono_r
    d_vals = jnp.linspace(d_min ** d_hyp, d_max ** d_hyp, d_bins) ** (1.0 / d_hyp)
    d = jnp.sum(pc * d_vals, axis=-1)
    return cw, pmono_r, pc, d


if __name__ == "__main__":
    N, L, C, fW, D, W_mono = 4, 3, 64, 256, 128, 32

    key = jax.random.PRNGKey(0)
    k_param, k_pose, k_pmv, k_dmv, k_pmono, k_dmono = jax.random.split(key, 6)

    raw = init_selector_params(k_param, L=L, C=C, nW=2, use_pred=True)
    sel = prepare_selector_params(raw, L=L)

    rel_pose = jax.random.normal(k_pose, (N, L, 3), jnp.float32)
    prob_mv = jax.nn.softmax(
        jax.random.normal(k_pmv, (N, fW, D), jnp.float32), axis=-1)
    mv_d = jax.random.uniform(k_dmv, (N, fW), jnp.float32, 0.5, 10.0)
    prob_mono = jax.nn.softmax(
        jax.random.normal(k_pmono, (N, W_mono, D), jnp.float32), axis=-1)
    d_mono = jax.random.uniform(k_dmono, (N, W_mono), jnp.float32, 0.5, 10.0)

    # tile_fw_max=128 -> 2-step grid over fW (exercises the tiled path).
    out = comp_d_net_forward(sel, rel_pose, prob_mv, mv_d, prob_mono, d_mono,
                             tile_fw_max=128)
    jax.block_until_ready(out)

    # ---- shape checks -------------------------------------------------------
    assert out["d_comp"].shape == (N, fW)
    assert out["prob_comp"].shape == (N, fW, D)
    assert out["prob_mono"].shape == (N, 1, fW, D)
    assert out["comp_w"].shape == (N, 2)

    # ---- structural checks --------------------------------------------------
    assert bool(jnp.all(jnp.isfinite(out["d_comp"])))
    assert bool(jnp.allclose(jnp.sum(out["comp_w"], axis=-1), 1.0, atol=1e-5))
    assert bool(jnp.allclose(jnp.sum(out["prob_comp"], axis=-1), 1.0, atol=5e-3))
    assert bool(jnp.all((out["d_comp"] >= 0.1 - 1e-2)
                        & (out["d_comp"] <= 15.0 + 1e-2)))

    # ---- pure-JAX reference (validates BN folding, sigmoid trick, resize) ---
    cw_ref, pmono_r_ref, pc_ref, d_ref = _reference_forward(
        raw, rel_pose, prob_mv, mv_d, prob_mono, d_mono)
    assert bool(jnp.allclose(out["comp_w"], cw_ref, atol=5e-3))
    assert bool(jnp.allclose(out["prob_comp"], pc_ref, atol=1e-3))
    assert bool(jnp.allclose(out["prob_mono"][:, 0], pmono_r_ref, atol=1e-3))
    assert bool(jnp.allclose(out["d_comp"], d_ref, atol=5e-2))

    print("KERNEL_OK")
</pallas_src>

<mosaic_0001>
module attributes {stable_mosaic.version = 11 : i64} {
  func.func @_fused_comp_kernel(%arg0: i32, %arg1: memref<4x9xf32, #tpu.memory_space<vmem>>, %arg2: memref<4x256xf32, #tpu.memory_space<vmem>>, %arg3: memref<4x32xf32, #tpu.memory_space<vmem>>, %arg4: memref<9x64xf32, #tpu.memory_space<vmem>>, %arg5: memref<1x64xf32, #tpu.memory_space<vmem>>, %arg6: memref<1x64xf32, #tpu.memory_space<vmem>>, %arg7: memref<1x64xf32, #tpu.memory_space<vmem>>, %arg8: memref<64x64xf32, #tpu.memory_space<vmem>>, %arg9: memref<1x64xf32, #tpu.memory_space<vmem>>, %arg10: memref<64x1xf32, #tpu.memory_space<vmem>>, %arg11: memref<1x1xf32, #tpu.memory_space<vmem>>, %arg12: memref<1x1x128xf32, #tpu.memory_space<vmem>>, %arg13: memref<4x128x128xf32, #tpu.memory_space<vmem>>, %arg14: memref<4x32x128xf32, #tpu.memory_space<vmem>>, %arg15: memref<128x32xf32, #tpu.memory_space<vmem>>, %arg16: memref<4x2xf32, #tpu.memory_space<vmem>>, %arg17: memref<4x128x128xf32, #tpu.memory_space<vmem>>, %arg18: memref<4x128xf32, #tpu.memory_space<vmem>>, %arg19: memref<4x128x128xf32, #tpu.memory_space<vmem>>) attributes {dimension_semantics = [#tpu.dimension_semantics<arbitrary>], iteration_bounds = array<i64: 2>, scalar_prefetch = 0 : i64, scratch_operands = 0 : i64, tpu.core_type = #tpu.core_type<tc>, window_params = [{pipeline_mode = #tpu.pipeline_mode<synchronous>, transform_indices = @transform_0, window_bounds = array<i64: 4, 9>}, {pipeline_mode = #tpu.pipeline_mode<synchronous>, transform_indices = @transform_1, window_bounds = array<i64: 4, 256>}, {pipeline_mode = #tpu.pipeline_mode<synchronous>, transform_indices = @transform_2, window_bounds = array<i64: 4, 32>}, {pipeline_mode = #tpu.pipeline_mode<synchronous>, transform_indices = @transform_3, window_bounds = array<i64: 9, 64>}, {pipeline_mode = #tpu.pipeline_mode<synchronous>, transform_indices = @transform_4, window_bounds = array<i64: 1, 64>}, {pipeline_mode = #tpu.pipeline_mode<synchronous>, transform_indices = @transform_5, window_bounds = array<i64: 1, 64>}, {pipeline_mode = #tpu.pipeline_mode<synchronous>, transform_indices = @transform_6, window_bounds = array<i64: 1, 64>}, {pipeline_mode = #tpu.pipeline_mode<synchronous>, transform_indices = @transform_7, window_bounds = array<i64: 64, 64>}, {pipeline_mode = #tpu.pipeline_mode<synchronous>, transform_indices = @transform_8, window_bounds = array<i64: 1, 64>}, {pipeline_mode = #tpu.pipeline_mode<synchronous>, transform_indices = @transform_9, window_bounds = array<i64: 64, 1>}, {pipeline_mode = #tpu.pipeline_mode<synchronous>, transform_indices = @transform_10, window_bounds = array<i64: 1, 1>}, {pipeline_mode = #tpu.pipeline_mode<synchronous>, transform_indices = @transform_11, window_bounds = array<i64: 1, 1, 128>}, {transform_indices = @transform_12, window_bounds = array<i64: 4, 128, 128>}, {pipeline_mode = #tpu.pipeline_mode<synchronous>, transform_indices = @transform_13, window_bounds = array<i64: 4, 32, 128>}, {transform_indices = @transform_14, window_bounds = array<i64: 128, 32>}, {pipeline_mode = #tpu.pipeline_mode<synchronous>, transform_indices = @transform_15, window_bounds = array<i64: 4, 2>}, {transform_indices = @transform_16, window_bounds = array<i64: 4, 128, 128>}, {transform_indices = @transform_17, window_bounds = array<i64: 4, 128>}, {transform_indices = @transform_18, window_bounds = array<i64: 4, 128, 128>}]} {
    %c0 = arith.constant 0 : index
    %c0_0 = arith.constant 0 : index
    %0 = vector.load %arg2[%c0, %c0_0] : memref<4x256xf32, #tpu.memory_space<vmem>>, vector<4x256xf32>
    %cst = arith.constant dense<0.000000e+00> : vector<4xf32>
    %1 = vector.multi_reduction <add>, %0, %cst [1] : vector<4x256xf32> to vector<4xf32>
    %2 = vector.shape_cast %1 : vector<4xf32> to vector<4x1xf32>
    %cst_1 = arith.constant 2.560000e+02 : f32
    %3 = vector.broadcast %cst_1 : f32 to vector<4x1xf32>
    %4 = arith.divf %2, %3 : vector<4x1xf32>
    %c0_2 = arith.constant 0 : index
    %c0_3 = arith.constant 0 : index
    %5 = vector.load %arg3[%c0_2, %c0_3] : memref<4x32xf32, #tpu.memory_space<vmem>>, vector<4x32xf32>
    %cst_4 = arith.constant dense<0.000000e+00> : vector<4xf32>
    %6 = vector.multi_reduction <add>, %5, %cst_4 [1] : vector<4x32xf32> to vector<4xf32>
    %7 = vector.shape_cast %6 : vector<4xf32> to vector<4x1xf32>
    %cst_5 = arith.constant 3.200000e+01 : f32
    %8 = vector.broadcast %cst_5 : f32 to vector<4x1xf32>
    %9 = arith.divf %7, %8 : vector<4x1xf32>
    %c0_6 = arith.constant 0 : index
    %c0_7 = arith.constant 0 : index
    %10 = vector.load %arg1[%c0_6, %c0_7] : memref<4x9xf32, #tpu.memory_space<vmem>>, vector<4x9xf32>
    %c0_8 = arith.constant 0 : index
    %c0_9 = arith.constant 0 : index
    %11 = vector.load %arg4[%c0_8, %c0_9] : memref<9x64xf32, #tpu.memory_space<vmem>>, vector<9x64xf32>
    %cst_10 = arith.constant dense<0.000000e+00> : vector<4x64xf32>
    %12 = tpu.matmul %10, %11, %cst_10 {dimension_numbers = #tpu.dot_dimension_numbers<[1], [0], [0], [1], [0, 0, 1, 1], [], []>} : vector<4x9xf32>, vector<9x64xf32>, vector<4x64xf32> -> vector<4x64xf32>
    %c0_11 = arith.constant 0 : index
    %c0_12 = arith.constant 0 : index
    %13 = vector.load %arg5[%c0_11, %c0_12] : memref<1x64xf32, #tpu.memory_space<vmem>>, vector<1x64xf32>
    %14 = vector.broadcast %4 : vector<4x1xf32> to vector<4x64xf32>
    %15 = vector.broadcast %13 : vector<1x64xf32> to vector<4x64xf32>
    %16 = arith.mulf %14, %15 : vector<4x64xf32>
    %17 = arith.addf %12, %16 : vector<4x64xf32>
    %c0_13 = arith.constant 0 : index
    %c0_14 = arith.constant 0 : index
    %18 = vector.load %arg6[%c0_13, %c0_14] : memref<1x64xf32, #tpu.memory_space<vmem>>, vector<1x64xf32>
    %19 = vector.broadcast %9 : vector<4x1xf32> to vector<4x64xf32>
    %20 = vector.broadcast %18 : vector<1x64xf32> to vector<4x64xf32>
    %21 = arith.mulf %19, %20 : vector<4x64xf32>
    %22 = arith.addf %17, %21 : vector<4x64xf32>
    %c0_15 = arith.constant 0 : index
    %c0_16 = arith.constant 0 : index
    %23 = vector.load %arg7[%c0_15, %c0_16] : memref<1x64xf32, #tpu.memory_space<vmem>>, vector<1x64xf32>
    %24 = vector.broadcast %23 : vector<1x64xf32> to vector<4x64xf32>
    %25 = arith.addf %22, %24 : vector<4x64xf32>
    %cst_17 = arith.constant 0.000000e+00 : f32
    %26 = vector.broadcast %cst_17 : f32 to vector<4x64xf32>
    %27 = arith.maximumf %25, %26 : vector<4x64xf32>
    %c0_18 = arith.constant 0 : index
    %c0_19 = arith.constant 0 : index
    %28 = vector.load %arg8[%c0_18, %c0_19] : memref<64x64xf32, #tpu.memory_space<vmem>>, vector<64x64xf32>
    %cst_20 = arith.constant dense<0.000000e+00> : vector<4x64xf32>
    %29 = tpu.matmul %27, %28, %cst_20 {dimension_numbers = #tpu.dot_dimension_numbers<[1], [0], [0], [1], [0, 0, 1, 1], [], []>} : vector<4x64xf32>, vector<64x64xf32>, vector<4x64xf32> -> vector<4x64xf32>
    %c0_21 = arith.constant 0 : index
    %c0_22 = arith.constant 0 : index
    %30 = vector.load %arg9[%c0_21, %c0_22] : memref<1x64xf32, #tpu.memory_space<vmem>>, vector<1x64xf32>
    %31 = vector.broadcast %30 : vector<1x64xf32> to vector<4x64xf32>
    %32 = arith.addf %29, %31 : vector<4x64xf32>
    %cst_23 = arith.constant 0.000000e+00 : f32
    %33 = vector.broadcast %cst_23 : f32 to vector<4x64xf32>
    %34 = arith.maximumf %32, %33 : vector<4x64xf32>
    %c0_24 = arith.constant 0 : index
    %c0_25 = arith.constant 0 : index
    %35 = vector.load %arg10[%c0_24, %c0_25] : memref<64x1xf32, #tpu.memory_space<vmem>>, vector<64x1xf32>
    %cst_26 = arith.constant dense<0.000000e+00> : vector<4x1xf32>
    %36 = tpu.matmul %34, %35, %cst_26 {dimension_numbers = #tpu.dot_dimension_numbers<[1], [0], [0], [1], [0, 0, 1, 1], [], []>} : vector<4x64xf32>, vector<64x1xf32>, vector<4x1xf32> -> vector<4x1xf32>
    %c0_27 = arith.constant 0 : index
    %c0_28 = arith.constant 0 : index
    %37 = vector.load %arg11[%c0_27, %c0_28] : memref<1x1xf32, #tpu.memory_space<vmem>>, vector<1x1xf32>
    %38 = vector.broadcast %37 : vector<1x1xf32> to vector<4x1xf32>
    %39 = arith.addf %36, %38 : vector<4x1xf32>
    %cst_29 = arith.constant 0.000000e+00 : f32
    %40 = vector.broadcast %cst_29 : f32 to vector<4x1xf32>
    %41 = arith.subf %40, %39 : vector<4x1xf32>
    %42 = math.exp %41 : vector<4x1xf32>
    %cst_30 = arith.constant 1.000000e+00 : f32
    %43 = vector.broadcast %cst_30 : f32 to vector<4x1xf32>
    %44 = arith.addf %43, %42 : vector<4x1xf32>
    %cst_31 = arith.constant 1.000000e+00 : f32
    %45 = vector.broadcast %cst_31 : f32 to vector<4x1xf32>
    %46 = arith.divf %45, %44 : vector<4x1xf32>
    %c0_32 = arith.constant 0 : index
    %c0_33 = arith.constant 0 : index
    %47 = vector.load %arg16[%c0_32, %c0_33] : memref<4x2xf32, #tpu.memory_space<vmem>>, vector<4x1xf32>
    tpu.vector_store %arg16[%c0_32, %c0_33], %46 {strides = array<i32>} : memref<4x2xf32, #tpu.memory_space<vmem>>, vector<4x1xf32>,
    %cst_34 = arith.constant 1.000000e+00 : f32
    %48 = vector.broadcast %cst_34 : f32 to vector<4x1xf32>
    %49 = arith.subf %48, %46 : vector<4x1xf32>
    %c0_35 = arith.constant 0 : index
    %c1 = arith.constant 1 : index
    %50 = vector.load %arg16[%c0_35, %c1] : memref<4x2xf32, #tpu.memory_space<vmem>>, vector<4x1xf32>
    tpu.vector_store %arg16[%c0_35, %c1], %49 {strides = array<i32>} : memref<4x2xf32, #tpu.memory_space<vmem>>, vector<4x1xf32>,
    %c0_36 = arith.constant 0 : index
    %c0_37 = arith.constant 0 : index
    %c0_38 = arith.constant 0 : index
    %51 = vector.load %arg13[%c0_36, %c0_37, %c0_38] : memref<4x128x128xf32, #tpu.memory_space<vmem>>, vector<4x128x128xf32>
    %c0_39 = arith.constant 0 : index
    %c0_40 = arith.constant 0 : index
    %52 = vector.load %arg15[%c0_39, %c0_40] : memref<128x32xf32, #tpu.memory_space<vmem>>, vector<128x32xf32>
    %c0_41 = arith.constant 0 : index
    %c0_42 = arith.constant 0 : index
    %c0_43 = arith.constant 0 : index
    %53 = vector.load %arg14[%c0_41, %c0_42, %c0_43] : memref<4x32x128xf32, #tpu.memory_space<vmem>>, vector<4x32x128xf32>
    %54 = vector.shape_cast %52 : vector<128x32xf32> to vector<1x128x32xf32>
    %55 = vector.shape_cast %54 : vector<1x128x32xf32> to vector<1x128x32xf32>
    %56 = vector.broadcast %55 : vector<1x128x32xf32> to vector<4x128x32xf32>
    %cst_44 = arith.constant dense<0.000000e+00> : vector<4x128x128xf32>
    %57 = tpu.matmul %56, %53, %cst_44 {dimension_numbers = #tpu.dot_dimension_numbers<[2], [1], [1], [2], [0, 0, 0, 1, 1, 2], [0], [0]>} : vector<4x128x32xf32>, vector<4x32x128xf32>, vector<4x128x128xf32> -> vector<4x128x128xf32>
    %c0_45 = arith.constant 0 : index
    %c0_46 = arith.constant 0 : index
    %c0_47 = arith.constant 0 : index
    %58 = vector.load %arg19[%c0_45, %c0_46, %c0_47] : memref<4x128x128xf32, #tpu.memory_space<vmem>>, vector<4x128x128xf32>
    tpu.vector_store %arg19[%c0_45, %c0_46, %c0_47], %57 {strides = array<i32>} : memref<4x128x128xf32, #tpu.memory_space<vmem>>, vector<4x128x128xf32>,
    %59 = vector.shape_cast %46 : vector<4x1xf32> to vector<4x1x1xf32>
    %60 = arith.subf %51, %57 : vector<4x128x128xf32>
    %61 = vector.broadcast %59 : vector<4x1x1xf32> to vector<4x128x128xf32>
    %62 = arith.mulf %61, %60 : vector<4x128x128xf32>
    %63 = arith.addf %57, %62 : vector<4x128x128xf32>
    %c0_48 = arith.constant 0 : index
    %c0_49 = arith.constant 0 : index
    %c0_50 = arith.constant 0 : index
    %64 = vector.load %arg17[%c0_48, %c0_49, %c0_50] : memref<4x128x128xf32, #tpu.memory_space<vmem>>, vector<4x128x128xf32>
    tpu.vector_store %arg17[%c0_48, %c0_49, %c0_50], %63 {strides = array<i32>} : memref<4x128x128xf32, #tpu.memory_space<vmem>>, vector<4x128x128xf32>,
    %c0_51 = arith.constant 0 : index
    %c0_52 = arith.constant 0 : index
    %c0_53 = arith.constant 0 : index
    %65 = vector.load %arg12[%c0_51, %c0_52, %c0_53] : memref<1x1x128xf32, #tpu.memory_space<vmem>>, vector<1x1x128xf32>
    %66 = vector.broadcast %65 : vector<1x1x128xf32> to vector<4x128x128xf32>
    %67 = arith.mulf %63, %66 : vector<4x128x128xf32>
    %cst_54 = arith.constant dense<0.000000e+00> : vector<4x128xf32>
    %68 = vector.multi_reduction <add>, %67, %cst_54 [2] : vector<4x128x128xf32> to vector<4x128xf32>
    %c0_55 = arith.constant 0 : index
    %c0_56 = arith.constant 0 : index
    %69 = vector.load %arg18[%c0_55, %c0_56] : memref<4x128xf32, #tpu.memory_space<vmem>>, vector<4x128xf32>
    tpu.vector_store %arg18[%c0_55, %c0_56], %68 {strides = array<i32>} : memref<4x128xf32, #tpu.memory_space<vmem>>, vector<4x128xf32>,
    return
  }
  func.func @transform_0(%arg0: i32) -> (i32, i32) {
    %c0_i32 = arith.constant 0 : i32
    %c0_i32_0 = arith.constant 0 : i32
    %c0_i32_1 = arith.constant 0 : i32
    return %c0_i32, %c0_i32_0 : i32, i32
  }
  func.func @transform_1(%arg0: i32) -> (i32, i32) {
    %c0_i32 = arith.constant 0 : i32
    %c0_i32_0 = arith.constant 0 : i32
    %c0_i32_1 = arith.constant 0 : i32
    return %c0_i32, %c0_i32_0 : i32, i32
  }
  func.func @transform_2(%arg0: i32) -> (i32, i32) {
    %c0_i32 = arith.constant 0 : i32
    %c0_i32_0 = arith.constant 0 : i32
    %c0_i32_1 = arith.constant 0 : i32
    return %c0_i32, %c0_i32_0 : i32, i32
  }
  func.func @transform_3(%arg0: i32) -> (i32, i32) {
    %c0_i32 = arith.constant 0 : i32
    %c0_i32_0 = arith.constant 0 : i32
    %c0_i32_1 = arith.constant 0 : i32
    return %c0_i32, %c0_i32_0 : i32, i32
  }
  func.func @transform_4(%arg0: i32) -> (i32, i32) {
    %c0_i32 = arith.constant 0 : i32
    %c0_i32_0 = arith.constant 0 : i32
    %c0_i32_1 = arith.constant 0 : i32
    return %c0_i32, %c0_i32_0 : i32, i32
  }
  func.func @transform_5(%arg0: i32) -> (i32, i32) {
    %c0_i32 = arith.constant 0 : i32
    %c0_i32_0 = arith.constant 0 : i32
    %c0_i32_1 = arith.constant 0 : i32
    return %c0_i32, %c0_i32_0 : i32, i32
  }
  func.func @transform_6(%arg0: i32) -> (i32, i32) {
    %c0_i32 = arith.constant 0 : i32
    %c0_i32_0 = arith.constant 0 : i32
    %c0_i32_1 = arith.constant 0 : i32
    return %c0_i32, %c0_i32_0 : i32, i32
  }
  func.func @transform_7(%arg0: i32) -> (i32, i32) {
    %c0_i32 = arith.constant 0 : i32
    %c0_i32_0 = arith.constant 0 : i32
    %c0_i32_1 = arith.constant 0 : i32
    return %c0_i32, %c0_i32_0 : i32, i32
  }
  func.func @transform_8(%arg0: i32) -> (i32, i32) {
    %c0_i32 = arith.constant 0 : i32
    %c0_i32_0 = arith.constant 0 : i32
    %c0_i32_1 = arith.constant 0 : i32
    return %c0_i32, %c0_i32_0 : i32, i32
  }
  func.func @transform_9(%arg0: i32) -> (i32, i32) {
    %c0_i32 = arith.constant 0 : i32
    %c0_i32_0 = arith.constant 0 : i32
    %c0_i32_1 = arith.constant 0 : i32
    return %c0_i32, %c0_i32_0 : i32, i32
  }
  func.func @transform_10(%arg0: i32) -> (i32, i32) {
    %c0_i32 = arith.constant 0 : i32
    %c0_i32_0 = arith.constant 0 : i32
    %c0_i32_1 = arith.constant 0 : i32
    return %c0_i32, %c0_i32_0 : i32, i32
  }
  func.func @transform_11(%arg0: i32) -> (i32, i32, i32) {
    %c0_i32 = arith.constant 0 : i32
    %c0_i32_0 = arith.constant 0 : i32
    %c0_i32_1 = arith.constant 0 : i32
    %c0_i32_2 = arith.constant 0 : i32
    return %c0_i32, %c0_i32_0, %c0_i32_1 : i32, i32, i32
  }
  func.func @transform_12(%arg0: i32) -> (i32, i32, i32) {
    %c0_i32 = arith.constant 0 : i32
    %c0_i32_0 = arith.constant 0 : i32
    %c0_i32_1 = arith.constant 0 : i32
    return %c0_i32, %arg0, %c0_i32_0 : i32, i32, i32
  }
  func.func @transform_13(%arg0: i32) -> (i32, i32, i32) {
    %c0_i32 = arith.constant 0 : i32
    %c0_i32_0 = arith.constant 0 : i32
    %c0_i32_1 = arith.constant 0 : i32
    %c0_i32_2 = arith.constant 0 : i32
    return %c0_i32, %c0_i32_0, %c0_i32_1 : i32, i32, i32
  }
  func.func @transform_14(%arg0: i32) -> (i32, i32) {
    %c0_i32 = arith.constant 0 : i32
    %c0_i32_0 = arith.constant 0 : i32
    return %arg0, %c0_i32 : i32, i32
  }
  func.func @transform_15(%arg0: i32) -> (i32, i32) {
    %c0_i32 = arith.constant 0 : i32
    %c0_i32_0 = arith.constant 0 : i32
    %c0_i32_1 = arith.constant 0 : i32
    return %c0_i32, %c0_i32_0 : i32, i32
  }
  func.func @transform_16(%arg0: i32) -> (i32, i32, i32) {
    %c0_i32 = arith.constant 0 : i32
    %c0_i32_0 = arith.constant 0 : i32
    %c0_i32_1 = arith.constant 0 : i32
    return %c0_i32, %arg0, %c0_i32_0 : i32, i32, i32
  }
  func.func @transform_17(%arg0: i32) -> (i32, i32) {
    %c0_i32 = arith.constant 0 : i32
    %c0_i32_0 = arith.constant 0 : i32
    return %c0_i32, %arg0 : i32, i32
  }
  func.func @transform_18(%arg0: i32) -> (i32, i32, i32) {
    %c0_i32 = arith.constant 0 : i32
    %c0_i32_0 = arith.constant 0 : i32
    %c0_i32_1 = arith.constant 0 : i32
    return %c0_i32, %arg0, %c0_i32_0 : i32, i32, i32
  }
}

</mosaic_0001>

<bundles_post_ra>
// kernel: comp_d_net_forward.1
= control target key start
LH: loop header
LB: loop body
LE: loop exit
PB: predicated region body
PF: predicated region fallthrough
CT: control target
= control target key end

     0   :  { %s6137_s0 = inlined_call_operand.vmem [shape: f32[4,9], index: 0, kind: input, shape index: {}]   ;;  %s6138_s1 = inlined_call_operand.vmem [shape: f32[4,256], index: 1, kind: input, shape index: {}]   ;;  %s6139_s2 = inlined_call_operand.vmem [shape: f32[4,32], index: 2, kind: input, shape index: {}]   ;;  %s6140_s3 = inlined_call_operand.hbm [shape: f32[9,64], index: 3, kind: input, shape index: {}]   ;;  %s6141_s4 = inlined_call_operand.vmem [shape: f32[1,64], index: 4, kind: input, shape index: {}]   ;;  %s6142_s5 = inlined_call_operand.hbm [shape: f32[1,64], index: 5, kind: input, shape index: {}]   ;;  %s6143_s6 = inlined_call_operand.hbm [shape: f32[1,64], index: 6, kind: input, shape index: {}]   ;;  %s6144_s7 = inlined_call_operand.hbm [shape: f32[64,64], index: 7, kind: input, shape index: {}]   ;;  %s6145_s8 = inlined_call_operand.hbm [shape: f32[1,64], index: 8, kind: input, shape index: {}]   ;;  %s6146_s9 = inlined_call_operand.vmem [shape: f32[64,1], index: 9, kind: input, shape index: {}]   ;;  %s6147_s10 = inlined_call_operand.<no memory space> [shape: f32[1,1], index: 10, kind: input, shape index: {}]   ;;  %s6148_s11 = inlined_call_operand.vmem [shape: f32[1,1,128], index: 11, kind: input, shape index: {}]   ;;  %s6149_s12 = inlined_call_operand.hbm [shape: f32[4,256,128], index: 12, kind: input, shape index: {}]   ;;  %s6150_s13 = inlined_call_operand.vmem [shape: f32[4,32,128], index: 13, kind: input, shape index: {}]   ;;  %s6151_s14 = inlined_call_operand.hbm [shape: f32[256,32], index: 14, kind: input, shape index: {}]   ;;  %s6152_s15 = inlined_call_operand.vmem [shape: f32[4,2], index: 15, kind: output, shape index: {0}]   ;;  %s6153_s16 = inlined_call_operand.hbm [shape: f32[4,256,128], index: 16, kind: output, shape index: {1}]   ;;  %s6154_s17 = inlined_call_operand.hbm [shape: f32[4,256], index: 17, kind: output, shape index: {2}]   ;;  %s6155_s18 = inlined_call_operand.hbm [shape: f32[4,256,128], index: 18, kind: output, shape index: {3}]  }
   0x1   :  { %6306 = sst [smem:[#allocation116_spill]] %s6137_s0  ;;  %v24_v0 = vstv %s6147_s10 }
   0x2   :  { %6307 = sst [smem:[#allocation117_spill]] %s6138_s1  ;;  %25 = vst [vmem:[#allocation2] sm:$0x1] %v24_v0 }
   0x3   :  { %6308 = sst [smem:[#allocation118_spill]] %s6139_s2 }
   0x4   :  { %6309 = sst [smem:[#allocation119_spill]] %s6140_s3 }
   0x5   :  { %6310 = sst [smem:[#allocation120_spill]] %s6141_s4 }
   0x6   :  { %6311 = sst [smem:[#allocation121_spill]] %s6142_s5 }
   0x7   :  { %6312 = sst [smem:[#allocation122_spill]] %s6146_s9 }
   0x8   :  { %6313 = sst [smem:[#allocation123_spill]] %s6148_s11 }
   0x9   :  { %6314 = sst [smem:[#allocation124_spill]] %s6150_s13 }
   0xa   :  { %6315 = sst [smem:[#allocation125_spill]] %s6152_s15 }
   0xb   :  { %6316 = sst [smem:[#allocation126_spill]] %s6153_s16 }
   0xc   :  { %6317 = sst [smem:[#allocation127_spill]] %s6154_s17 }
   0xd   :  { %6318 = sst [smem:[#allocation128_spill]] %s6155_s18 }
   0xe   :  { %26 = vsyncpa [#allocation4], 0 }
   0xf   :  { %27 = vsyncpa [#allocation7], 0 }
  0x10   :  { %28 = vsyncpa [#allocation10], 0 }
  0x11   :  { %29 = vsyncpa [#allocation13], 0 }
  0x12   :  { %31 = vsyncpa [#allocation13 + $0x1], 0 }
  0x13   :  { %32 = vsyncpa [#allocation5], 0 }
  0x14   :  { %34 = vsyncpa [#allocation5 + $0x1], 0 }
  0x15   :  { %35 = vsyncpa [#allocation17], 0 }
  0x16   :  { %37 = vsyncpa [#allocation17 + $0x1], 0  ;;  %s4103_s29 = smov 0   ;;  %s4105_s30 = smov 0  }
  0x17   :  { %s4107_s0 = smov 0   ;;  %s4109_s19 = smov 0  }
  0x18 LB: > { %6319 = sst [smem:[#allocation32_spill]] %s3953_s29  ;;  %s4124_s10 = sadd.s32 4294967295, %s3965_s19   ;;  %s3965_s19 = sphi %s4109_s19, %s6604_s19   ;;  %s3961_s0 = sphi %s4107_s0, %s6608_s0   ;;  %s3957_s30 = sphi %s4105_s30, %s6607_s30   ;;  %s3953_s29 = sphi %s4103_s29, %s6606_s29  }
  0x19   : > { %s6156_s1 = sadd.s32 4294967294, %s3965_s19   ;;  %s4128_s20 = sadd.s32 1, %s3965_s19  }
  0x1a   : > { %6320 = sst [smem:[#allocation33_spill]] %s4128_s20  ;;  %s302_s21 = sadd.s32 1, %s3961_s0 }
  0x1b   : > { %s299_s22 = ssub.s32 %s3965_s19, %s4128_s20  ;;  %p309_p0 = scmp.ne.s32.totalorder %s3961_s0, %s3957_s30 }
  0x1c   : > { %p300_p1 = scmp.eq.s32.totalorder %s299_s22, 0  ;;  %p310_p2 = scmp.eq.s32.totalorder %s3965_s19, 0 }
  0x1d   : > { %p315_p3 = scmp.ne.s32.totalorder %s3957_s30, %s3953_s29  ;;  %p6162_p4 = scmp.eq.s32.totalorder %s4124_s10, 0 }
  0x1e   : > { %s4140_s2 = scalar_select %p300_p1, %s3961_s0, %s302_s21  }
  0x1f   : > { %p4142_p5 = por %p310_p2, %p309_p0  ;;  %p4148_p6 = por %p6162_p4, %p315_p3 }
  0x20   : > { %6321 = sst [smem:[#allocation34_spill]] %s4140_s2  ;;  %p407_p7 = scmp.eq.s32.totalorder %s4124_s10, 1 }
  0x21   : > { %s6322_s23 = scalar_select %p4142_p5, 1, 0 }
  0x22   : > { %s6323_s24 = scalar_select %p4148_p6, 1, 0 }
  0x23   : > { %p413_p8 = scmp.eq.s32.totalorder %s6156_s1, 1  ;;  %p3106_p9 = scmp.ge.s32.totalorder %s3965_s19, 1 }
  0x24   : > { %p472_p10 = scmp.lt.s32.totalorder %s3965_s19, 3  ;;  %p4157_p11 = por %p407_p7, %p309_p0 }
  0x25   : > { %p4161_p12 = por %p413_p8, %p315_p3  ;;  %s3967_s28 = smov [#allocation6]  }
  0x26   : > { %s6324_s25 = scalar_select %p4157_p11, 1, 0 }
  0x27   : > { %s6326_s26 = scalar_select %p4161_p12, 1, 0 }
  0x28   : > { %6325 = sst [smem:[#allocation35_spill]] %s6324_s25  ;;  %p4165_p13 = pnand %p3106_p9, %p472_p10 }
  0x29   : > { %6327 = sst [smem:[#allocation36_spill]] %s6326_s26  ;;  %s510_s21 = sshll.u32 %s3967_s28, 4  ;;  %s511_s21 = int_to_ptr.vmem [resolvable:$true] %s510_s21 }
  0x2a   : > { %s6328_s27 = scalar_select %p4165_p13, 1, 0 }
  0x2b   : > { %p3603_p1 = pneg %p4165_p13  ;;  %s3968_s1 = smov [#allocation9]  }
  0x2c   : > { %s531_s2 = sshll.u32 %s3968_s1, 4  ;;  %s6330_s5 = sld [smem:[#allocation121_spill]]  ;;  %s4177_s2 = int_to_ptr.vmem [resolvable:$true] %s531_s2 }
  0x2d   : > { %p4173_p2 = pnand %p3603_p1, %p6162_p4 }
  0x2f   : > { %p4187_p3 = pneg %p4173_p2 }
  0x32   : > { %s3715_s29 = scalar_lea.hbm %s6330_s5, 16 }
  0x33   : > { %p3716_p0 = scmp.ne.s32.totalorder %s6330_s5, %s3715_s29  ;;  %p3722_p9 = scmp.lt.u32.totalorder %s3715_s29, %s6330_s5 }
  0x35   : > { %p3718_p7 = pnand %p4187_p3, %p3716_p0 }
  0x37   : > { %p3719_p8 = pneg %p3718_p7 }
  0x39   : > { %p3724_p10 = pnand %p3722_p9, %p3719_p8 }
  0x3b   : > { %3727 = shalt.err (!%p3724_p10)
}
  0x3c   : > { %s3728_s20 = scalar_lea.vmem %s511_s21, 16  ;;  %s3735_s17 = scalar_lea.vmem %s511_s21, 32 }
  0x3d   : > { %p3729_p1 = scmp.ne.s32.totalorder %s511_s21, %s3728_s20  ;;  %p3736_p11 = scmp.lt.s32.totalorder %s511_s21, %s511_s21 }
  0x3e   : > { %p3737_p6 = scmp.lt.s32.totalorder %s3735_s17, %s3728_s20 }
  0x3f   : > { %p3731_p4 = pnand %p3729_p1, %p4187_p3 }
  0x40   : > { %p3738_p13 = por %p3737_p6, %p3736_p11 }
  0x41   : > { %p3732_p12 = pneg %p3731_p4 }
  0x43   : > { %p3739_p5 = pnand %p3738_p13, %p3732_p12 }
  0x45   : > { %3742 = shalt.err (!%p3739_p5)
}
  0x46   : > { %3609 = dma.hbm_to_vmem [thread:$0]  (!%p4173_p2), %s6330_s5, 16, %s511_s21, [#allocation7]  }
  0x47   : > { %s3743_s1 = scalar_lea.hbm %s6144_s7, 1024 }
  0x48   : > { %p3744_p4 = scmp.ne.s32.totalorder %s6144_s7, %s3743_s1  ;;  %p3750_p5 = scmp.lt.u32.totalorder %s3743_s1, %s6144_s7 }
  0x4a   : > { %p3746_p0 = pnand %p3744_p4, %p4187_p3 }
  0x4c   : > { %p3747_p6 = pneg %p3746_p0 }
  0x4e   : > { %p3752_p11 = pnand %p3750_p5, %p3747_p6 }
  0x50   : > { %3755 = shalt.err (!%p3752_p11)
}
  0x51   : > { %s3756_s21 = scalar_lea.vmem %s4177_s2, 1024  ;;  %p3764_p8 = scmp.lt.s32.totalorder %s4177_s2, %s4177_s2 }
  0x52   : > { %p3757_p12 = scmp.ne.s32.totalorder %s4177_s2, %s3756_s21  ;;  %p3765_p9 = scmp.lt.s32.totalorder %s3756_s21, %s3756_s21 }
  0x54   : > { %p3759_p13 = pnand %p3757_p12, %p4187_p3  ;;  %p3766_p10 = por %p3765_p9, %p3764_p8 }
  0x56   : > { %p3760_p7 = pneg %p3759_p13 }
  0x58   : > { %p3767_p1 = pnand %p3766_p10, %p3760_p7 }
  0x5a   : > { %3770 = shalt.err (!%p3767_p1)
}
  0x5b   : > { %s3969_s11 = smov 128   ;;  %s3970_s25 = smov 8  }
  0x5c   : > { %3615 = dma.hbm_to_vmem [thread:$0]  (!%p4173_p2), %s6144_s7, 1024, %s4177_s2, [#allocation10], %s3969_s11, %s3969_s11, %s3970_s25  }
  0x5d   : > { %s3971_s16 = smov [#allocation3]   ;;  %s3972_s1 = smov [#allocation8]  }
  0x5e   : > { %s493_s29 = sshll.u32 %s3971_s16, 4  ;;  %s521_s20 = sshll.u32 %s3972_s1, 4  ;;  %s494_s29 = int_to_ptr.vmem [resolvable:$true] %s493_s29  ;;  %s522_s20 = int_to_ptr.vmem [resolvable:$true] %s521_s20 }
  0x5f   : > { %s6332_s3 = sld [smem:[#allocation119_spill]] }
  0x65   : > { %s3771_s5 = scalar_lea.hbm %s6332_s3, 256 }
  0x66   : > { %p3772_p4 = scmp.ne.s32.totalorder %s6332_s3, %s3771_s5  ;;  %p3778_p5 = scmp.lt.u32.totalorder %s3771_s5, %s6332_s3 }
  0x68   : > { %p3774_p0 = pnand %p3772_p4, %p4187_p3 }
  0x6a   : > { %p3775_p6 = pneg %p3774_p0 }
  0x6c   : > { %p3780_p11 = pnand %p3778_p5, %p3775_p6 }
  0x6e   : > { %3783 = shalt.err (!%p3780_p11)
}
  0x6f   : > { %s3784_s2 = scalar_lea.vmem %s494_s29, 256  ;;  %p3792_p8 = scmp.lt.s32.totalorder %s494_s29, %s494_s29 }
  0x70   : > { %p3785_p12 = scmp.ne.s32.totalorder %s494_s29, %s3784_s2  ;;  %p3793_p9 = scmp.lt.s32.totalorder %s3784_s2, %s3784_s2 }
  0x72   : > { %p3787_p13 = pnand %p3785_p12, %p4187_p3  ;;  %p3794_p10 = por %p3793_p9, %p3792_p8 }
  0x74   : > { %p3788_p7 = pneg %p3787_p13 }
  0x76   : > { %p3795_p1 = pnand %p3794_p10, %p3788_p7 }
  0x78   : > { %3798 = shalt.err (!%p3795_p1)
}
  0x79   : > { %3606 = dma.hbm_to_vmem [thread:$0]  (!%p4173_p2), %s6332_s3, 256, %s494_s29, [#allocation4], %s3969_s11, %s3969_s11, %s3970_s25  }
  0x7a   : > { %s3799_s9 = scalar_lea.hbm %s6143_s6, 16 }
  0x7b   : > { %p3800_p4 = scmp.ne.s32.totalorder %s6143_s6, %s3799_s9  ;;  %p3806_p5 = scmp.lt.u32.totalorder %s3799_s9, %s6143_s6 }
  0x7d   : > { %p3802_p0 = pnand %p3800_p4, %p4187_p3 }
  0x7f   : > { %p3803_p6 = pneg %p3802_p0 }
  0x81   : > { %p3808_p11 = pnand %p3806_p5, %p3803_p6 }
  0x83   : > { %3811 = shalt.err (!%p3808_p11)
}
  0x84   : > { %s3812_s17 = scalar_lea.vmem %s522_s20, 16  ;;  %s3819_s11 = scalar_lea.vmem %s522_s20, 32 }
  0x85   : > { %p3813_p12 = scmp.ne.s32.totalorder %s522_s20, %s3812_s17  ;;  %p3820_p8 = scmp.lt.s32.totalorder %s522_s20, %s522_s20 }
  0x86   : > { %p3821_p9 = scmp.lt.s32.totalorder %s3819_s11, %s3812_s17 }
  0x87   : > { %p3815_p13 = pnand %p3813_p12, %p4187_p3 }
  0x88   : > { %p3822_p10 = por %p3821_p9, %p3820_p8 }
  0x89   : > { %p3816_p7 = pneg %p3815_p13 }
  0x8b   : > { %p3823_p1 = pnand %p3822_p10, %p3816_p7 }
  0x8d   : > { %3826 = shalt.err (!%p3823_p1)
}
  0x8e   : > { %3612 = dma.hbm_to_vmem [thread:$0]  (!%p4173_p2), %s6143_s6, 16, %s522_s20, [#allocation7]  }
  0x8f   : > { %s3973_s21 = smov [#allocation11]   ;;  %s3827_s4 = scalar_lea.hbm %s6145_s8, 16 }
  0x90   : > { %s545_s2 = sshll.u32 %s3973_s21, 4  ;;  %p3828_p4 = scmp.ne.s32.totalorder %s6145_s8, %s3827_s4  ;;  %s546_s2 = int_to_ptr.vmem [resolvable:$true] %s545_s2 }
  0x91   : > { %p3834_p5 = scmp.lt.u32.totalorder %s3827_s4, %s6145_s8 }
  0x92   : > { %p3830_p0 = pnand %p3828_p4, %p4187_p3 }
  0x94   : > { %p3831_p6 = pneg %p3830_p0 }
  0x96   : > { %p3836_p11 = pnand %p3834_p5, %p3831_p6 }
  0x98   : > { %3839 = shalt.err (!%p3836_p11)
}
  0x99   : > { %s3840_s20 = scalar_lea.vmem %s546_s2, 16  ;;  %s3847_s16 = scalar_lea.vmem %s546_s2, 32 }
  0x9a   : > { %p3841_p12 = scmp.ne.s32.totalorder %s546_s2, %s3840_s20  ;;  %p3848_p8 = scmp.lt.s32.totalorder %s546_s2, %s546_s2 }
  0x9b   : > { %p3849_p9 = scmp.lt.s32.totalorder %s3847_s16, %s3840_s20 }
  0x9c   : > { %p3843_p13 = pnand %p3841_p12, %p4187_p3 }
  0x9d   : > { %p3850_p10 = por %p3849_p9, %p3848_p8 }
  0x9e   : > { %p3844_p7 = pneg %p3843_p13 }
  0xa0   : > { %p3851_p1 = pnand %p3850_p10, %p3844_p7 }
  0xa2   : > { %3854 = shalt.err (!%p3851_p1)
}
  0xa3   : > { %3618 = dma.hbm_to_vmem [thread:$0]  (!%p4173_p2), %s6145_s8, 16, %s546_s2, [#allocation10]  }
  0xa4   : > { %p3112_p4 = scmp.ge.s32.totalorder %s3965_s19, 2 }
  0xa6   : > { %564 = sbr.rel (%p3112_p4) target bundleno = 212 (0xd4), region = 68 }
  0xad   : > { %s568_s28 = sand.u32 1, %s3965_s19   ;;  %s570_s11 = sand.u32 1, %s3961_s0  }
  0xae   : > { %s3113_s22 = sshll.u32 %s570_s11, 9  ;;  %s3216_s25 = sshll.u32 %s3965_s19, 11 }
  0xaf   : > { %s578_s2 = scalar_lea.hbm %s6149_s12, %s3216_s25  ;;  %p6333_p2 = scmp.ne.s32.totalorder %s6322_s23, 0 }
  0xb0   : > { %s572_s15 = scalar_lea.vmem [#allocation12], %s3113_s22  ;;  %s3974_s9 = smov 4096  }
  0xb1   : > { %s3564_s13 = scalar_select %p6333_p2, [#allocation0], [#allocation25] }
  0xb2   : > { %s591_s4 = sshll.u32 %s572_s15, 4  ;;  %3565 = sst [smem:[#allocation20]] (%p6333_p2), %s3974_s9  ;;  %s592_s4 = int_to_ptr.vmem [resolvable:$true] %s591_s4 }
  0xb3   : > { %s583_s5 = sld [smem:[%s3564_s13]]   ;;  %s3975_s18 = smov 2048  }
  0xb4   : > { %3566 = sst [smem:[#allocation20 + $0x1]] (%p6333_p2), %s3975_s18  ;;  %s3976_s26 = smov 16  }
  0xb5   : > { %3567 = sst [smem:[#allocation20 + $0x2]] (%p6333_p2), %s3976_s26  ;;  %s3977_s20 = smov 128  }
  0xb6   : > { %3568 = sst [smem:[#allocation20 + $0x3]] (%p6333_p2), %s3977_s20  ;;  %s3978_s1 = smov 8  }
  0xb7   : > { %3569 = sst [smem:[#allocation20 + $0x4]] (%p6333_p2), %s3977_s20  ;;  %s4303_s22 = scalar_lea.sflag [#allocation13], %s568_s28 }
  0xb8   : > { %3570 = sst [smem:[#allocation20 + $0x5]] (%p6333_p2), %s3978_s1  ;;  %s3979_s29 = smov [#allocation19]  }
  0xb9   : > { %s3116_s16 = sshll.u32 %s583_s5, 26  ;;  %s3118_s21 = sshll.u32 %s570_s11, 7 }
  0xba   : > { %s3117_s17 = sadd.s32 134217728, %s3116_s16  ;;  %s4311_s9 = scalar_lea.hbm %s6151_s14, %s3216_s25 }
  0xbb   : > { %3571 = dma.general (%p6333_p2), %s578_s2, 8192, %s592_s4, %s4303_s22, %s3979_s29, [#allocation20], %s3117_s17, 0  }
  0xbc   : > { %s618_s5 = scalar_lea.vmem [#allocation14], %s3118_s21  ;;  %s3855_s28 = scalar_lea.hbm %s4311_s9, 2048 }
  0xbd   : > { %s625_s18 = sshll.u32 %s618_s5, 4  ;;  %p3856_p3 = scmp.ne.s32.totalorder %s4311_s9, %s3855_s28  ;;  %s4313_s18 = int_to_ptr.vmem [resolvable:$true] %s625_s18 }
  0xbe   : > { %s3859_s4 = scalar_lea.hbm %s6151_s14, 4096  ;;  %p3860_p5 = scmp.lt.u32.totalorder %s4311_s9, %s6151_s14 }
  0xbf   : > { %p3857_p0 = pnand %p3856_p3, %p6333_p2  ;;  %p3861_p11 = scmp.lt.u32.totalorder %s3859_s4, %s3855_s28 }
  0xc0   : > { %p3863_p13 = scmp.lt.u32.totalorder %s3855_s28, %s4311_s9 }
  0xc1   : > { %p3858_p6 = pneg %p3857_p0  ;;  %p3862_p12 = por %p3861_p11, %p3860_p5 }
  0xc3   : > { %p3864_p7 = por %p3863_p13, %p3862_p12 }
  0xc5   : > { %p3865_p8 = pnand %p3864_p7, %p3858_p6 }
  0xc7   : > { %3868 = shalt.err (!%p3865_p8)
}
  0xc8   : > { %s3869_s20 = scalar_lea.vmem %s4313_s18, 2048  ;;  %s3980_s16 = smov [#allocation14]  }
  0xc9   : > { %p3870_p9 = scmp.ne.s32.totalorder %s4313_s18, %s3869_s20  ;;  %s3873_s1 = sshll.u32 %s3980_s16, 4  ;;  %s3874_s1 = int_to_ptr.vmem [resolvable:$false] %s3873_s1 }
  0xca   : > { %s3875_s17 = scalar_lea.vmem %s3874_s1, 4096  ;;  %p3876_p3 = scmp.lt.s32.totalorder %s4313_s18, %s3874_s1 }
  0xcb   : > { %p3871_p10 = pnand %p3870_p9, %p6333_p2  ;;  %p3877_p0 = scmp.lt.s32.totalorder %s3875_s17, %s3869_s20 }
  0xcd   : > { %p3872_p1 = pneg %p3871_p10  ;;  %p3878_p5 = por %p3877_p0, %p3876_p3 }
  0xcf   : > { %p3879_p11 = pnand %p3878_p5, %p3872_p1 }
  0xd1   : > { %3882 = shalt.err (!%p3879_p11)
}
  0xd2   : > { %s3981_s29 = smov 128   ;;  %s3982_s21 = smov 8  }
  0xd3   : > { %3572 = dma.hbm_to_vmem [thread:$0]  (%p6333_p2), %s4311_s9, 2048, %s4313_s18, %s4303_s22, %s3981_s29, %s3981_s29, %s3982_s21  }
  0xd4 PF: > { %p6334_p6 = scmp.ne.s32.totalorder %s6328_s27, 0 }
  0xd6   : > { %637 = sbr.rel (%p6334_p6) target bundleno = 1409 (0x581), region = 80 }
  0xdd   : > { %p6335_p12 = scmp.eq.s32.totalorder %s4124_s10, 0 }
  0xdf   : > { %3928 = dma.done.wait (%p6335_p12), [#allocation4], 256   ;;  %p6336_p13 = pmov %p6335_p12 }
  0xe0   : > { %p6337_p7 = pmov %p6335_p12 }
  0xe1   : > { %3930 = vsyncadd (%p6336_p13), [#allocation4], 4294967040 }
  0xe2   : > { %3932 = dma.done.wait (%p6337_p7), [#allocation7], 32   ;;  %p6338_p8 = pmov %p6337_p7 }
  0xe3   : > { %p6339_p9 = pmov %p6337_p7 }
  0xe4   : > { %3934 = vsyncadd (%p6338_p8), [#allocation7], 4294967264 }
  0xe5   : > { %3936 = dma.done.wait (%p6339_p9), [#allocation10], 1040   ;;  %p6340_p2 = pmov %p6337_p7 }
  0xe6   : > { %s659_s23 = sand.u32 1, %s4124_s10   ;;  %s4353_s27 = sand.u32 1, %s3957_s30  }
  0xe7   : > { %3938 = vsyncadd (%p6340_p2), [#allocation10], 4294966256  ;;  %s4356_s22 = sshll.u32 %s4353_s27, 9  ;;  %s660_s13 = scalar_lea.sflag [#allocation13], %s659_s23 }
  0xe8   : > { %s4361_s15 = scalar_lea.vmem [#allocation12], %s4356_s22  ;;  %p6341_p10 = scmp.ne.s32.totalorder %s6323_s24, 0 }
  0xea   : > { %3940 = dma.done.wait (%p6341_p10), %s660_s13, 10240  }
  0xeb   : > { %3942 = vsyncadd (%p6341_p10), %s660_s13, 4294957056  ;;  %v3983_v1 = vmov 0.0|0.0   ;;  %vm3984_vm0 = vmmov 0   ;;  %v3985_v2 = vmov 0.0   ;;  %vm778_vm1 = vcmask 1040384   ;;  %v764_v3 = vld [vmem:[#allocation3] sm:$0xff] }
  0xec   : > { %3494 = vmatprep.subr.bf16.mxu0 %v3983_v1  ;;  %3498 = vmatprep.subr.bf16.mxu1 %v3983_v1  ;;  %vm748_vm2 = vcmask 1043456   ;;  %v765_v4 = vld [vmem:[#allocation3 + $0x8] sm:$0x1]  ;;  %vm3986_vm3 = vmmov 1   ;;  %s6342_s24 = sld [smem:[#allocation117_spill]]  ;;  %v870_v7 = vld [vmem:[#allocation9] sm:$0xff] }
  0xed   : > { %3325 = vmatprep.mubr.msk.f32.mxu0 %vm3984_vm0, %v3985_v2  ;;  %3344 = vmatprep.mubr.msk.f32.mxu1 %vm3984_vm0, %v3985_v2  ;;  %vm3496_vm4 = vmpackc.low %vm778_vm1, %vm3986_vm3  ;;  %v3495_v5 = vpack.c.bf16 %v765_v4, %v764_v3  ;;  %v871_v10 = vld [vmem:[#allocation9 + $0x8] sm:$0xff]  ;;  %s6343_s11 = sld [smem:[#allocation116_spill]]  ;;  %vm774_vm5 = vcmask 72704   ;;  %s6344_s26 = sld [smem:[#allocation118_spill]]  ;;  %vm757_vm6 = vcmask 257024   ;;  %v872_v17 = vld [vmem:[#allocation9 + $0x10] sm:$0xff] }
  0xee   : > { %v3499_v12 = vpack.c.bf16 %v871_v10, %v870_v7  ;;  %v873_v18 = vld [vmem:[#allocation9 + $0x18] sm:$0xff]  ;;  %v874_v20 = vld [vmem:[#allocation9 + $0x20] sm:$0xff]  ;;  %v875_v21 = vld [vmem:[#allocation9 + $0x28] sm:$0xff]  ;;  %s6345_s16 = sld [smem:[#allocation122_spill]]  ;;  %s6346_s4 = sld [smem:[#allocation120_spill]]  ;;  %vm885_vm7 = vcmask 523264  }
  0xef   : > { %3497 = vmatpush3.bf16.msk.msra.mxu0 %vm3496_vm4, %v3495_v5  ;;  %v3502_v19 = vpack.c.bf16 %v873_v18, %v872_v17  ;;  %v3505_v22 = vpack.c.bf16 %v875_v21, %v874_v20  ;;  %v876_v23 = vld [vmem:[#allocation9 + $0x30] sm:$0xff]  ;;  %v877_v24 = vld [vmem:[#allocation9 + $0x38] sm:$0xff]  ;;  %s6347_s21 = sld [smem:[#allocation124_spill]]  ;;  %s3128_s25 = sshll.u32 %s4353_s27, 7  ;;  %vm1159_vm8 = vcmask 261120   ;;  %vm1054_vm9 = vcmask 3072  }
  0xf0   : > { %3510 = vmatprep.subr.bf16.mxu0 %v3983_v1  ;;  %3500 = vmatpush3.bf16.msra.mxu1 %v3499_v12  ;;  %v3508_v25 = vpack.c.bf16 %v877_v24, %v876_v23  ;;  %v3135_v39 = vld [vmem:[#allocation6] ss:$0 sm:$0xff]  ;;  %v3136_v46 = vld [vmem:[#allocation8] ss:$0 sm:$0xff]  ;;  %s4428_s20 = scalar_lea.vmem [#allocation14], %s3128_s25  ;;  %s4642_s5 = scalar_lea.vmem [#allocation18], %s4356_s22 }
  0xf1   : > { %3501 = vmatprep.subr.bf16.mxu1 %v3983_v1  ;;  %v4431_v62 = vld [vmem:[%s4428_s20] sm:$0xff]  ;;  %v4437_v63 = vld [vmem:[%s4428_s20 + $0x8] sm:$0xff]  ;;  %v4440_v0 = vld [vmem:[%s4428_s20 + $0x10] sm:$0xff]  ;;  %s6369_s28 = sld [smem:[#allocation125_spill]]  ;;  %vm1061_vm10 = vcmask 11272   ;;  %s5260_s1 = scalar_lea.vmem [#allocation15], %s4356_s22 }
  0xf2   : > { %v744_v6 = vld [vmem:[%s6342_s24] sm:$0xff]  ;;  %v4467_v5 = vld [vmem:[%s4428_s20 + $0x38] sm:$0xff]  ;;  %v4496_v12 = vld [vmem:[%s4428_s20 + $0x60] sm:$0xff]  ;;  %vm2439_vm11 = vcmask 130112   ;;  %vm2446_vm12 = vcmask 195712   ;;  %vm2453_vm13 = vcmask 261312  }
  0xf3   : > { %v746_v8 = vcombine.high %v744_v6, %v744_v6  ;;  %v749_v9 = vsel %vm748_vm2, %v744_v6, 0.0  ;;  %v763_v11 = vld [vmem:[%s6343_s11] sm:$0xf]  ;;  %v4460_v4 = vld [vmem:[%s4428_s20 + $0x30] sm:$0xff]  ;;  %v4470_v6 = vld [vmem:[%s4428_s20 + $0x40] sm:$0xff]  ;;  %s3989_s11 = smov 1  }
  0xf4   : > { %v756_v15 = vld [vmem:[%s6344_s26] sm:$0xf]  ;;  %3326 = vmatmul.mubr.msk.f32.vlgmr.msra.gmra.mrb[0].mxu0 %vm774_vm5, %v763_v11  ;;  %3503 = vmatpush3.bf16.msra.mxu1 %v3502_v19  ;;  %v961_v27 = vld [vmem:[%s6345_s16 + $0x8] sm:$0xff]  ;;  %v962_v28 = vld [vmem:[%s6345_s16 + $0x10] sm:$0xff]  ;;  %vm2460_vm14 = vcmask 326912   ;;  %vm2467_vm15 = vcmask 392512  }
  0xf5   : > { %v750_v13 = vsel %vm748_vm2, %v746_v8, 0.0  ;;  %3363 = vmatprep.mubr.msk.f32.mxu0 %vm3984_vm0, %v3985_v2  ;;  %v758_v16 = vsel %vm757_vm6, %v756_v15, 0.0  ;;  %3504 = vmatprep.subr.bf16.mxu1 %v3983_v1  ;;  %v960_v26 = vld [vmem:[%s6345_s16] sm:$0xff]  ;;  %v963_v30 = vld [vmem:[%s6345_s16 + $0x18] sm:$0xff]  ;;  %v965_v33 = vld [vmem:[%s6345_s16 + $0x28] sm:$0xff]  ;;  %vm2474_vm0 = vcmask 458112  }
  0xf6   : > { %v751_v14 = vadd.f32 %v750_v13, %v749_v9  ;;  %v3511_v29 = vpack.c.bf16 %v961_v27, %v960_v26  ;;  %v3514_v31 = vpack.c.bf16 %v963_v30, %v962_v28  ;;  %v964_v32 = vld [vmem:[%s6345_s16 + $0x20] sm:$0xff]  ;;  %v966_v50 = vld [vmem:[%s6345_s16 + $0x30] sm:$0xff]  ;;  %v967_v51 = vld [vmem:[%s6345_s16 + $0x38] sm:$0xff]  ;;  %vm2481_vm1 = vcmask 523712   ;;  %s3130_s22 = sshll.u32 %s4353_s27, 2  ;;  %s2785_s17 = scalar_lea.sflag [#allocation5], %s4353_s27 }
  0xf7   : > { %v3517_v34 = vpack.c.bf16 %v965_v33, %v964_v32  ;;  %v3132_v40 = vld [vmem:[%s6346_s4] ss:$0 sm:$0xff]  ;;  %v3520_v52 = vpack.c.bf16 %v967_v51, %v966_v50  ;;  %v1144_v54 = vld [vmem:[%s6347_s21 + $0x8] sm:$0xff]  ;;  %v1145_v55 = vld [vmem:[%s6347_s21 + $0x10] sm:$0xff]  ;;  %vm2488_vm2 = vcmask 589312   ;;  %vm2495_vm3 = vcmask 654912  }
  0xf8   : > { %752 = vadd.xlane.f32.xlu0 %v751_v14  ;;  %3506 = vmatpush3.bf16.msra.mxu1 %v3505_v22  ;;  %v1143_v53 = vld [vmem:[%s6347_s21] sm:$0xff]  ;;  %v1146_v57 = vld [vmem:[%s6347_s21 + $0x18] sm:$0xff]  ;;  %v1148_v59 = vld [vmem:[%s6347_s21 + $0x28] sm:$0xff]  ;;  %vm6304_vm4 = vcmask 720512   ;;  %vm2509_vm5 = vcmask 786112   ;;  %vm2516_vm6 = vcmask 851712  }
  0xf9   : > { %3507 = vmatprep.subr.bf16.mxu1 %v3983_v1  ;;  %3512 = vmatpush3.bf16.msra.mxu0 %v3511_v29  ;;  %v3522_v56 = vpack.c.bf16 %v1144_v54, %v1143_v53  ;;  %v1147_v58 = vld [vmem:[%s6347_s21 + $0x20] sm:$0xff]  ;;  %v3526_v60 = vpack.c.bf16 %v1146_v57, %v1145_v55  ;;  %v4450_v2 = vld [vmem:[%s4428_s20 + $0x20] sm:$0xff]  ;;  %v4487_v9 = vld [vmem:[%s4428_s20 + $0x58] sm:$0xff]  ;;  %s6056_s29 = scalar_lea.sflag [#allocation17], %s659_s23 }
  0xfa   : > { %3513 = vmatprep.subr.bf16.mxu0 %v3983_v1  ;;  %v4426_v61 = vpack.c.bf16 %v1148_v59, %v1147_v58  ;;  %v4457_v3 = vld [vmem:[%s4428_s20 + $0x28] sm:$0xff]  ;;  %v4480_v8 = vld [vmem:[%s4428_s20 + $0x50] sm:$0xff]  ;;  %v1153_v15 = vld [vmem:[%s6347_s21 + $0x50] sm:$0xff] }
  0xfb   : > { %v4477_v7 = vld [vmem:[%s4428_s20 + $0x48] sm:$0xff]  ;;  %v1152_v11 = vld [vmem:[%s6347_s21 + $0x48] sm:$0xff]  ;;  %v3137_v20 = vld [vmem:[#allocation11] ss:$0 sm:$0xff] }
  0xfc   : > { %759 = vadd.xlane.f32.xlu0 %v758_v16  ;;  %3509 = vmatpush3.bf16.msra.mxu1 %v3508_v25  ;;  %v1151_v10 = vld [vmem:[%s6347_s21 + $0x40] sm:$0xff]  ;;  %v1154_v16 = vld [vmem:[%s6347_s21 + $0x58] sm:$0xff]  ;;  %v4519_v19 = vld [vmem:[%s4428_s20 + $0x78] sm:$0xff] }
  0xfd   : > { %3515 = vmatpush3.bf16.msra.mxu0 %v3514_v31  ;;  %3523 = vmatprep.subr.bf16.mxu1 %v3522_v56  ;;  %v3538_v13 = vpack.c.bf16 %v1152_v11, %v1151_v10  ;;  %v4503_v14 = vld [vmem:[%s4428_s20 + $0x68] sm:$0xff]  ;;  %v4512_v17 = vld [vmem:[%s4428_s20 + $0x70] sm:$0xff]  ;;  %v3542_v18 = vpack.c.bf16 %v1154_v16, %v1153_v15  ;;  %v1149_v22 = vld [vmem:[%s6347_s21 + $0x30] sm:$0xff] }
  0xfe   : > { %3516 = vmatprep.subr.bf16.mxu0 %v3983_v1  ;;  %v1150_v23 = vld [vmem:[%s6347_s21 + $0x38] sm:$0xff]  ;;  %v1155_v28 = vld [vmem:[%s6347_s21 + $0x60] sm:$0xff]  ;;  %v1156_v29 = vld [vmem:[%s6347_s21 + $0x68] sm:$0xff] }
  0xff   : > { %v3534_v27 = vpack.c.bf16 %v1150_v23, %v1149_v22  ;;  %v3546_v30 = vpack.c.bf16 %v1156_v29, %v1155_v28  ;;  %v1157_v31 = vld [vmem:[%s6347_s21 + $0x70] sm:$0xff]  ;;  %v1158_v32 = vld [vmem:[%s6347_s21 + $0x78] sm:$0xff] }
 0x100   : > { %v3550_v33 = vpack.c.bf16 %v1158_v32, %v1157_v31 }
 0x101   : > { %3518 = vmatpush3.bf16.msra.mxu0 %v3517_v34  ;;  %v3987_v34 = vmov 0  }
 0x102   : > { %3519 = vmatprep.subr.bf16.mxu0 %v3983_v1  ;;  %v4447_v1 = vld [vmem:[%s4428_s20 + $0x18] sm:$0xff]  ;;  %3708 = vset.pattern.permute.xlu1 %v3987_v34  ;;  %s6451_s20 = sld [smem:[#allocation123_spill]] }
 0x103   : > { %3709 = vset.pattern.permute.xlu0 %v3987_v34 }
 0x105   : > { %3521 = vmatpush3.bf16.msra.mxu0 %v3520_v52 }
 0x106   : > { %3531 = vmatprep.subr.bf16.mxu0 %v4426_v61 }
 0x185   : > { %v753_v35 = vpop.xlane.xlu0 %752 }
 0x186   : > { %v755_v37 = vmul.f32 0.00390625, %v753_v35 }
 0x188   : > { %v773_v42 = vmul.f32 %v3132_v40, %v755_v37 }
 0x189   : > { %v760_v36 = vpop.xlane.xlu0 %759 }
 0x18a   : > { %v762_v38 = vmul.f32 0.03125, %v760_v36 }
 0x18c   : > { %v859_v41 = vmul.f32 %v3135_v39, %v762_v38 }
 0x1c7   : > { %v848_v43 = vpop.f32.mrb[0].mxu0 }
 0x1c8   : > { %v849_v44 = vadd.f32 %v848_v43, %v773_v42  ;;  %v3327_v45 = vpop.f32.mrb[1].mxu0 }
 0x1ca   : > { %v860_v47 = vadd.f32 %v859_v41, %v849_v44 }
 0x1cc   : > { %v868_v48 = vadd.f32 %v3136_v46, %v860_v47  ;;  %v3139_v47 = vld [vmem:[#allocation2] ss:$0 sm:$0xff] }
 0x1ce   : > { %v869_v49 = vmax.f32 %v868_v48, 0.0 }
 0x1d0   : > { %3345 = vmatmul.mubr.msk.f32.vlgmr.msra.gmra.mrb[0].mxu1 %vm885_vm7, %v869_v49 }
 0x1d1   : > { %3525 = vmatpush3.bf16.msra.mxu1 %v3522_v56  ;;  %3374 = vmatprep.mubr.msk.f32.mxu1 %vm1159_vm8, %v4431_v62 }
 0x1d2   : > { %3527 = vmatprep.subr.bf16.mxu1 %v3526_v60 }
 0x1d5   : > { %3529 = vmatpush3.bf16.msra.mxu1 %v3526_v60 }
 0x1d6   : > { %3539 = vmatprep.subr.bf16.mxu1 %v3538_v13 }
 0x1d8   : > { %3375 = vmatmul.mubr.msk.f32.vlgmr.msra.gmra.mrb[2].mxu1 %vm1159_vm8, %v4437_v63 }
 0x1d9   : > { %3377 = vmatprep.mubr.msk.f32.mxu1 %vm1159_vm8, %v4440_v0  ;;  %3541 = vmatpush3.bf16.msra.mxu1 %v3538_v13 }
 0x1da   : > { %3543 = vmatprep.subr.bf16.mxu1 %v3542_v18 }
 0x1dc   : > { %3378 = vmatmul.mubr.msk.f32.gmra.mrb[4].mxu1 %vm1159_vm8, %v4447_v1 }
 0x1dd   : > { %3380 = vmatprep.mubr.msk.f32.mxu1 %vm1159_vm8, %v4450_v2  ;;  %3545 = vmatpush3.bf16.msra.mxu1 %v3542_v18 }
 0x1e0   : > { %3381 = vmatmul.mubr.msk.f32.gmra.mrb[6].mxu1 %vm1159_vm8, %v4457_v3 }
 0x1e1   : > { %3383 = vmatprep.mubr.msk.f32.mxu1 %vm1159_vm8, %v4460_v4 }
 0x1e4   : > { %3384 = vmatmul.mubr.msk.f32.gmra.mrb[8].mxu1 %vm1159_vm8, %v4467_v5 }
 0x1e5   : > { %3386 = vmatprep.mubr.msk.f32.mxu1 %vm1159_vm8, %v4470_v6 }
 0x1e8   : > { %3387 = vmatmul.mubr.msk.f32.gmra.mrb[10].mxu1 %vm1159_vm8, %v4477_v7 }
 0x1e9   : > { %3389 = vmatprep.mubr.msk.f32.mxu1 %vm1159_vm8, %v4480_v8 }
 0x1ec   : > { %3390 = vmatmul.mubr.msk.f32.gmra.mrb[12].mxu1 %vm1159_vm8, %v4487_v9 }
 0x1ed   : > { %3392 = vmatprep.mubr.msk.f32.mxu1 %vm1159_vm8, %v4496_v12 }
 0x1f0   : > { %3393 = vmatmul.mubr.msk.f32.gmra.mrb[14].mxu1 %vm1159_vm8, %v4503_v14 }
 0x1f1   : > { %3395 = vmatprep.mubr.msk.f32.mxu1 %vm1159_vm8, %v4512_v17 }
 0x1f4   : > { %3396 = vmatmul.mubr.msk.f32.gmra.mrb[16].mxu1 %vm1159_vm8, %v4519_v19 }
 0x1f5   : > { %3438 = vmatprep.mubr.msk.f32.mxu1 %vm1159_vm8, %v4431_v62 }
 0x1f8   : > { %3439 = vmatmul.mubr.msk.f32.vlgmr.msra.gmra.mrb[18].mxu1 %vm1159_vm8, %v4437_v63 }
 0x1f9   : > { %3441 = vmatprep.mubr.msk.f32.mxu1 %vm1159_vm8, %v4440_v0 }
 0x1fc   : > { %3442 = vmatmul.mubr.msk.f32.gmra.mrb[20].mxu1 %vm1159_vm8, %v4447_v1 }
 0x1fd   : > { %3444 = vmatprep.mubr.msk.f32.mxu1 %vm1159_vm8, %v4450_v2 }
 0x200   : > { %3445 = vmatmul.mubr.msk.f32.gmra.mrb[22].mxu1 %vm1159_vm8, %v4457_v3 }
 0x201   : > { %3447 = vmatprep.mubr.msk.f32.mxu1 %vm1159_vm8, %v4460_v4 }
 0x204   : > { %3448 = vmatmul.mubr.msk.f32.gmra.mrb[24].mxu1 %vm1159_vm8, %v4467_v5 }
 0x205   : > { %3450 = vmatprep.mubr.msk.f32.mxu1 %vm1159_vm8, %v4470_v6 }
 0x208   : > { %3451 = vmatmul.mubr.msk.f32.gmra.mrb[26].mxu1 %vm1159_vm8, %v4477_v7 }
 0x209   : > { %3453 = vmatprep.mubr.msk.f32.mxu1 %vm1159_vm8, %v4480_v8 }
 0x20c   : > { %3454 = vmatmul.mubr.msk.f32.gmra.mrb[28].mxu1 %vm1159_vm8, %v4487_v9 }
 0x20d   : > { %3456 = vmatprep.mubr.msk.f32.mxu1 %vm1159_vm8, %v4496_v12 }
 0x210   : > { %3457 = vmatmul.mubr.msk.f32.gmra.mrb[30].mxu1 %vm1159_vm8, %v4503_v14 }
 0x211   : > { %3459 = vmatprep.mubr.msk.f32.mxu1 %vm1159_vm8, %v4512_v17 }
 0x214   : > { %3460 = vmatmul.mubr.msk.f32.gmra.mrb[32].mxu1 %vm1159_vm8, %v4519_v19 }
 0x2a3   : > { %v955_v21 = vpop.f32.mrb[0].mxu1 }
 0x2a4   : > { %v956_v24 = vadd.f32 %v3137_v20, %v955_v21  ;;  %v3346_v25 = vpop.f32.mrb[1].mxu1 }
 0x2a6   : > { %v959_v26 = vmax.f32 %v956_v24, 0.0 }
 0x2a8   : > { %3364 = vmatmul.mubr.msk.f32.vlgmr.msra.gmra.mrb[2].mxu0 %vm885_vm7, %v959_v26  ;;  %vm2523_vm7 = vcmask 917312  }
 0x2a9   : > { %3533 = vmatpush3.bf16.msra.mxu0 %v4426_v61  ;;  %3406 = vmatprep.mubr.msk.f32.mxu0 %vm1159_vm8, %v4431_v62  ;;  %v3988_v61 = vmov 1966171168  }
 0x2aa   : > { %3535 = vmatprep.subr.bf16.mxu0 %v3534_v27 }
 0x2ab   : > { %v4639_v35 = vpop.f32.mrb[2].mxu1 }
 0x2ac   : > { %1789 = vst [vmem:[%s4642_s5 + $0x8] sm:$0xff] %v4639_v35  ;;  %v4646_v36 = vpop.f32.mrb[3].mxu1 }
 0x2ad   : > { %3537 = vmatpush3.bf16.msra.mxu0 %v3534_v27  ;;  %1788 = vst [vmem:[%s4642_s5] sm:$0xff] %v4646_v36 }
 0x2ae   : > { %3547 = vmatprep.subr.bf16.mxu0 %v3546_v30 }
 0x2af   : > { %v4650_v37 = vpop.f32.mrb[4].mxu1 }
 0x2b0   : > { %3407 = vmatmul.mubr.msk.f32.vlgmr.msra.gmra.mrb[4].mxu0 %vm1159_vm8, %v4437_v63  ;;  %6348 = vst [vmem:[#allocation37_spill] sm:$0xff] %v4650_v37  ;;  %1791 = vst [vmem:[%s4642_s5 + $0x18] sm:$0xff] %v4650_v37  ;;  %v4654_v38 = vpop.f32.mrb[5].mxu1  ;;  %v4989_v37 = vld [vmem:[%s4361_s15 + $0xc8] sm:$0xff] }
 0x2b1   : > { %3409 = vmatprep.mubr.msk.f32.mxu0 %vm1159_vm8, %v4440_v0  ;;  %3549 = vmatpush3.bf16.msra.mxu0 %v3546_v30  ;;  %6349 = vst [vmem:[#allocation38_spill] sm:$0xff] %v4654_v38  ;;  %1790 = vst [vmem:[%s4642_s5 + $0x10] sm:$0xff] %v4654_v38  ;;  %v4995_v38 = vld [vmem:[%s4361_s15 + $0xc0] sm:$0xff] }
 0x2b2   : > { %3551 = vmatprep.subr.bf16.mxu0 %v3550_v33  ;;  %6406 = vst [vmem:[#allocation94_spill] sm:$0xff] %v4989_v37  ;;  %6407 = vst [vmem:[#allocation95_spill] sm:$0xff] %v4995_v38  ;;  %v5103_v38 = vld [vmem:[%s4361_s15 + $0x180] sm:$0xff]  ;;  %v5109_v37 = vld [vmem:[%s4361_s15 + $0x150] sm:$0xff] }
 0x2b3   : > { %v4658_v39 = vpop.f32.mrb[6].mxu1  ;;  %6420 = vst [vmem:[#allocation108_spill] sm:$0xff] %v5103_v38  ;;  %6421 = vst [vmem:[#allocation109_spill] sm:$0xff] %v5109_v37 }
 0x2b4   : > { %3410 = vmatmul.mubr.msk.f32.gmra.mrb[6].mxu0 %vm1159_vm8, %v4447_v1  ;;  %1793 = vst [vmem:[%s4642_s5 + $0x28] sm:$0xff] %v4658_v39  ;;  %v4662_v40 = vpop.f32.mrb[7].mxu1 }
 0x2b5   : > { %3412 = vmatprep.mubr.msk.f32.mxu0 %vm1159_vm8, %v4450_v2  ;;  %3553 = vmatpush3.bf16.msra.mxu0 %v3550_v33  ;;  %1792 = vst [vmem:[%s4642_s5 + $0x20] sm:$0xff] %v4662_v40 }
 0x2b7   : > { %v4666_v41 = vpop.f32.mrb[8].mxu1 }
 0x2b8   : > { %3413 = vmatmul.mubr.msk.f32.gmra.mrb[8].mxu0 %vm1159_vm8, %v4457_v3  ;;  %6350 = vst [vmem:[#allocation39_spill] sm:$0xff] %v4666_v41  ;;  %1795 = vst [vmem:[%s4642_s5 + $0x38] sm:$0xff] %v4666_v41  ;;  %v4670_v42 = vpop.f32.mrb[9].mxu1  ;;  %v5006_v41 = vld [vmem:[%s4361_s15 + $0x78] sm:$0xff] }
 0x2b9   : > { %3415 = vmatprep.mubr.msk.f32.mxu0 %vm1159_vm8, %v4460_v4  ;;  %6351 = vst [vmem:[#allocation40_spill] sm:$0xff] %v4670_v42  ;;  %1794 = vst [vmem:[%s4642_s5 + $0x30] sm:$0xff] %v4670_v42  ;;  %v5012_v42 = vld [vmem:[%s4361_s15 + $0x70] sm:$0xff] }
 0x2ba   : > { %6408 = vst [vmem:[#allocation96_spill] sm:$0xff] %v5006_v41  ;;  %v5089_v41 = vld [vmem:[%s4361_s15 + $0x140] sm:$0xff] }
 0x2bb   : > { %v4674_v43 = vpop.f32.mrb[10].mxu1  ;;  %6419 = vst [vmem:[#allocation107_spill] sm:$0xff] %v5089_v41  ;;  %v6448_v41 = vld [vmem:[#allocation38_spill] sm:$0xff] }
 0x2bc   : > { %3416 = vmatmul.mubr.msk.f32.gmra.mrb[10].mxu0 %vm1159_vm8, %v4467_v5  ;;  %6352 = vst [vmem:[#allocation41_spill] sm:$0xff] %v4674_v43  ;;  %1797 = vst [vmem:[%s4642_s5 + $0x48] sm:$0xff] %v4674_v43  ;;  %v4678_v44 = vpop.f32.mrb[11].mxu1  ;;  %v5029_v43 = vld [vmem:[%s4361_s15 + $0x100] sm:$0xff] }
 0x2bd   : > { %3418 = vmatprep.mubr.msk.f32.mxu0 %vm1159_vm8, %v4470_v6  ;;  %1796 = vst [vmem:[%s4642_s5 + $0x40] sm:$0xff] %v4678_v44  ;;  %6411 = vst [vmem:[#allocation99_spill] sm:$0xff] %v5029_v43  ;;  %v5129_v43 = vld [vmem:[%s4361_s15 + $0x170] sm:$0xff] }
 0x2be   : > { %6424 = vst [vmem:[#allocation112_spill] sm:$0xff] %v5129_v43  ;;  %v5235_v43 = vld [vmem:[%s4361_s15 + $0x1d8] sm:$0xff] }
 0x2bf   : > { %v4682_v45 = vpop.f32.mrb[12].mxu1 }
 0x2c0   : > { %3419 = vmatmul.mubr.msk.f32.gmra.mrb[12].mxu0 %vm1159_vm8, %v4477_v7  ;;  %6353 = vst [vmem:[#allocation42_spill] sm:$0xff] %v4682_v45  ;;  %1799 = vst [vmem:[%s4642_s5 + $0x58] sm:$0xff] %v4682_v45  ;;  %v4686_v46 = vpop.f32.mrb[13].mxu1  ;;  %v5023_v45 = vld [vmem:[%s4361_s15 + $0xd0] sm:$0xff] }
 0x2c1   : > { %3421 = vmatprep.mubr.msk.f32.mxu0 %vm1159_vm8, %v4480_v8  ;;  %1798 = vst [vmem:[%s4642_s5 + $0x50] sm:$0xff] %v4686_v46  ;;  %6410 = vst [vmem:[#allocation98_spill] sm:$0xff] %v5023_v45  ;;  %v5139_v45 = vld [vmem:[%s4361_s15 + $0x190] sm:$0xff] }
 0x2c2   : > { %6425 = vst [vmem:[#allocation113_spill] sm:$0xff] %v5139_v45 }
 0x2c4   : > { %3422 = vmatmul.mubr.msk.f32.gmra.mrb[14].mxu0 %vm1159_vm8, %v4487_v9 }
 0x2c5   : > { %3424 = vmatprep.mubr.msk.f32.mxu0 %vm1159_vm8, %v4496_v12 }
 0x2c8   : > { %3425 = vmatmul.mubr.msk.f32.gmra.mrb[16].mxu0 %vm1159_vm8, %v4503_v14 }
 0x2c9   : > { %3427 = vmatprep.mubr.msk.f32.mxu0 %vm1159_vm8, %v4512_v17 }
 0x2cc   : > { %3428 = vmatmul.mubr.msk.f32.gmra.mrb[18].mxu0 %vm1159_vm8, %v4519_v19 }
 0x2cd   : > { %3470 = vmatprep.mubr.msk.f32.mxu0 %vm1159_vm8, %v4431_v62  ;;  %v1854_v62 = vunpack.c.l.s4 %v3988_v61 }
 0x2d0   : > { %3471 = vmatmul.mubr.msk.f32.vlgmr.msra.gmra.mrb[20].mxu0 %vm1159_vm8, %v4437_v63  ;;  %v6172_v63 = vlaneseq }
 0x2d1   : > { %3473 = vmatprep.mubr.msk.f32.mxu0 %vm1159_vm8, %v4440_v0  ;;  %v4714_v0 = vpop.f32.mrb[14].mxu1 }
 0x2d2   : > { %1801 = vst [vmem:[%s4642_s5 + $0x68] sm:$0xff] %v4714_v0 }
 0x2d4   : > { %3474 = vmatmul.mubr.msk.f32.gmra.mrb[22].mxu0 %vm1159_vm8, %v4447_v1 }
 0x2d5   : > { %3476 = vmatprep.mubr.msk.f32.mxu0 %vm1159_vm8, %v4450_v2  ;;  %v4720_v2 = vpop.f32.mrb[15].mxu1 }
 0x2d6   : > { %1800 = vst [vmem:[%s4642_s5 + $0x60] sm:$0xff] %v4720_v2 }
 0x2d8   : > { %3477 = vmatmul.mubr.msk.f32.gmra.mrb[24].mxu0 %vm1159_vm8, %v4457_v3 }
 0x2d9   : > { %3479 = vmatprep.mubr.msk.f32.mxu0 %vm1159_vm8, %v4460_v4  ;;  %v4728_v4 = vpop.f32.mrb[16].mxu1 }
 0x2da   : > { %6359 = vst [vmem:[#allocation48_spill] sm:$0xff] %v4728_v4  ;;  %1803 = vst [vmem:[%s4642_s5 + $0x78] sm:$0xff] %v4728_v4  ;;  %v5086_v4 = vld [vmem:[%s4361_s15 + $0x148] sm:$0xff] }
 0x2db   : > { %6418 = vst [vmem:[#allocation106_spill] sm:$0xff] %v5086_v4 }
 0x2dc   : > { %3480 = vmatmul.mubr.msk.f32.gmra.mrb[26].mxu0 %vm1159_vm8, %v4467_v5  ;;  %v4734_v5 = vpop.f32.mrb[17].mxu1 }
 0x2dd   : > { %3482 = vmatprep.mubr.msk.f32.mxu0 %vm1159_vm8, %v4470_v6  ;;  %v1855_v6 = vunpack.c.0.s8 %v1854_v62  ;;  %1802 = vst [vmem:[%s4642_s5 + $0x70] sm:$0xff] %v4734_v5  ;;  %v6457_v38 = vsub.f32 %v5012_v42, %v4734_v5 }
 0x2e0   : > { %3483 = vmatmul.mubr.msk.f32.gmra.mrb[28].mxu0 %vm1159_vm8, %v4477_v7  ;;  %v4737_v7 = vshrl.u32 %v6172_v63, 7 }
 0x2e1   : > { %3485 = vmatprep.mubr.msk.f32.mxu0 %vm1159_vm8, %v4480_v8  ;;  %v4741_v8 = vpop.f32.mrb[18].mxu1 }
 0x2e2   : > { %6360 = vst [vmem:[#allocation49_spill] sm:$0xff] %v4737_v7  ;;  %1821 = vst [vmem:[%s4642_s5 + $0x108] sm:$0xff] %v4741_v8  ;;  %v4747_v10 = vpop.f32.mrb[19].mxu1  ;;  %v1943_v24 = vsub.s32 0, %v4737_v7 }
 0x2e3   : > { %6362 = vst [vmem:[#allocation51_spill] sm:$0xff] %v4747_v10  ;;  %1820 = vst [vmem:[%s4642_s5 + $0x100] sm:$0xff] %v4747_v10  ;;  %v5126_v10 = vld [vmem:[%s4361_s15 + $0x178] sm:$0xff] }
 0x2e4   : > { %3486 = vmatmul.mubr.msk.f32.gmra.mrb[30].mxu0 %vm1159_vm8, %v4487_v9  ;;  %6423 = vst [vmem:[#allocation111_spill] sm:$0xff] %v5126_v10 }
 0x2e5   : > { %3488 = vmatprep.mubr.msk.f32.mxu0 %vm1159_vm8, %v4496_v12  ;;  %v4755_v12 = vpop.f32.mrb[20].mxu1 }
 0x2e6   : > { %1823 = vst [vmem:[%s4642_s5 + $0x118] sm:$0xff] %v4755_v12  ;;  %v4761_v13 = vpop.f32.mrb[21].mxu1 }
 0x2e7   : > { %1822 = vst [vmem:[%s4642_s5 + $0x110] sm:$0xff] %v4761_v13  ;;  %v4766_v15 = vpop.f32.mrb[22].mxu1 }
 0x2e8   : > { %3489 = vmatmul.mubr.msk.f32.gmra.mrb[32].mxu0 %vm1159_vm8, %v4503_v14  ;;  %v1858_v14 = vsub.s32 %v1855_v6, %v4737_v7  ;;  %1825 = vst [vmem:[%s4642_s5 + $0x128] sm:$0xff] %v4766_v15 }
 0x2e9   : > { %3491 = vmatprep.mubr.msk.f32.mxu0 %vm1159_vm8, %v4512_v17  ;;  %v4772_v17 = vpop.f32.mrb[23].mxu1 }
 0x2ea   : > { %6365 = vst [vmem:[#allocation54_spill] sm:$0xff] %v4772_v17  ;;  %1824 = vst [vmem:[%s4642_s5 + $0x120] sm:$0xff] %v4772_v17 }
 0x2ec   : > { %3492 = vmatmul.mubr.msk.f32.gmra.mrb[34].mxu0 %vm1159_vm8, %v4519_v19  ;;  %v4780_v19 = vpop.f32.mrb[24].mxu1  ;;  %vm2530_vm8 = vcmask 982912  }
 0x2ed   : > { %6367 = vst [vmem:[#allocation56_spill] sm:$0xff] %v4780_v19  ;;  %1827 = vst [vmem:[%s4642_s5 + $0x138] sm:$0xff] %v4780_v19  ;;  %v4786_v21 = vpop.f32.mrb[25].mxu1  ;;  %v5151_v19 = vld [vmem:[%s4361_s15 + $0x1a0] sm:$0xff] }
 0x2ee   : > { %6368 = vst [vmem:[#allocation57_spill] sm:$0xff] %v4786_v21  ;;  %1826 = vst [vmem:[%s4642_s5 + $0x130] sm:$0xff] %v4786_v21  ;;  %v4794_v25 = vpop.f32.mrb[26].mxu1 }
 0x2ef   : > { %6370 = vst [vmem:[#allocation58_spill] sm:$0xff] %v4794_v25  ;;  %1829 = vst [vmem:[%s4642_s5 + $0x148] sm:$0xff] %v4794_v25  ;;  %v4800_v27 = vpop.f32.mrb[27].mxu1 }
 0x2f0   : > { %6372 = vst [vmem:[#allocation60_spill] sm:$0xff] %v4800_v27  ;;  %1828 = vst [vmem:[%s4642_s5 + $0x140] sm:$0xff] %v4800_v27  ;;  %v4808_v31 = vpop.f32.mrb[28].mxu1  ;;  %v4978_v27 = vld [vmem:[%s4361_s15 + $0x68] sm:$0xff] }
 0x2f1   : > { %6374 = vst [vmem:[#allocation62_spill] sm:$0xff] %v4808_v31  ;;  %1831 = vst [vmem:[%s4642_s5 + $0x158] sm:$0xff] %v4808_v31  ;;  %v4814_v32 = vpop.f32.mrb[29].mxu1  ;;  %v4972_v31 = vld [vmem:[%s4361_s15 + $0xb8] sm:$0xff] }
 0x2f2   : > { %6375 = vst [vmem:[#allocation63_spill] sm:$0xff] %v4814_v32  ;;  %1830 = vst [vmem:[%s4642_s5 + $0x150] sm:$0xff] %v4814_v32 }
 0x2f3   : > { %6404 = vst [vmem:[#allocation92_spill] sm:$0xff] %v4972_v31  ;;  %v5069_v31 = vld [vmem:[%s4361_s15 + $0x138] sm:$0xff]  ;;  %6428 = vst [vmem:[#allocation114_spill] sm:$0xff] %v5151_v19 }
 0x2f8   : > { %v6429_v32 = vld [vmem:[#allocation62_spill] sm:$0xff] }
 0x37b   : > { %v1044_v48 = vpop.f32.mrb[2].mxu0 }
 0x37c   : > { %v1045_v49 = vadd.f32 %v3139_v47, %v1044_v48  ;;  %v3365_v50 = vpop.f32.mrb[3].mxu0  ;;  %v4818_v48 = vpop.f32.mrb[30].mxu1 }
 0x37d   : > { %6376 = vst [vmem:[#allocation64_spill] sm:$0xff] %v4818_v48  ;;  %1833 = vst [vmem:[%s4642_s5 + $0x168] sm:$0xff] %v4818_v48  ;;  %v4824_v50 = vpop.f32.mrb[31].mxu1  ;;  %v5072_v48 = vld [vmem:[%s4361_s15 + $0x130] sm:$0xff] }
 0x37e   : > { %v1048_v51 = vsub.f32 0.0, %v1045_v49  ;;  %6378 = vst [vmem:[#allocation66_spill] sm:$0xff] %v4824_v50  ;;  %1832 = vst [vmem:[%s4642_s5 + $0x160] sm:$0xff] %v4824_v50  ;;  %v5052_v50 = vld [vmem:[%s4361_s15 + $0x128] sm:$0xff] }
 0x37f   : > { %6416 = vst [vmem:[#allocation104_spill] sm:$0xff] %v5072_v48 }
 0x380   : > { %v1049_v52 = vmul.f32 1.442695, %v1048_v51 }
 0x382   : > { %3711 = vpow2.f32 %v1049_v52 }
 0x383   : > { %v4690_v53 = vpop.f32.mrb[4].mxu0 }
 0x384   : > { %6354 = vst [vmem:[#allocation43_spill] sm:$0xff] %v4690_v53  ;;  %1805 = vst [vmem:[%s4642_s5 + $0x88] sm:$0xff] %v4690_v53  ;;  %v4694_v54 = vpop.f32.mrb[5].mxu0  ;;  %v5046_v53 = vld [vmem:[%s4361_s15 + $0x118] sm:$0xff] }
 0x385   : > { %1804 = vst [vmem:[%s4642_s5 + $0x80] sm:$0xff] %v4694_v54 }
 0x387   : > { %v4698_v55 = vpop.f32.mrb[6].mxu0 }
 0x388   : > { %6355 = vst [vmem:[#allocation44_spill] sm:$0xff] %v4698_v55  ;;  %1807 = vst [vmem:[%s4642_s5 + $0x98] sm:$0xff] %v4698_v55  ;;  %v4702_v56 = vpop.f32.mrb[7].mxu0  ;;  %v5040_v55 = vld [vmem:[%s4361_s15 + $0xe8] sm:$0xff] }
 0x389   : > { %1806 = vst [vmem:[%s4642_s5 + $0x90] sm:$0xff] %v4702_v56  ;;  %6412 = vst [vmem:[#allocation100_spill] sm:$0xff] %v5040_v55  ;;  %v5161_v55 = vld [vmem:[%s4361_s15 + $0x1b0] sm:$0xff] }
 0x38a   : > { %6432 = vst [vmem:[#allocation115_spill] sm:$0xff] %v5161_v55  ;;  %v5208_v55 = vld [vmem:[%s4361_s15 + $0x1c8] sm:$0xff] }
 0x38b   : > { %v4706_v57 = vpop.f32.mrb[8].mxu0 }
 0x38c   : > { %v3712_v58 = vpop.eup %3711  ;;  %1809 = vst [vmem:[%s4642_s5 + $0xa8] sm:$0xff] %v4706_v57  ;;  %v4710_v59 = vpop.f32.mrb[9].mxu0 }
 0x38d   : > { %6356 = vst [vmem:[#allocation45_spill] sm:$0xff] %v4710_v59  ;;  %v1051_v60 = vadd.f32 1.0, %v3712_v58  ;;  %1808 = vst [vmem:[%s4642_s5 + $0xa0] sm:$0xff] %v4710_v59  ;;  %v4832_v58 = vpop.f32.mrb[32].mxu1 }
 0x38e   : > { %6380 = vst [vmem:[#allocation68_spill] sm:$0xff] %v4832_v58  ;;  %1835 = vst [vmem:[%s4642_s5 + $0x178] sm:$0xff] %v4832_v58  ;;  %v4961_v58 = vld [vmem:[%s4361_s15 + $0x50] sm:$0xff] }
 0x38f   : > { %3713 = vrcp.f32 %v1051_v60  ;;  %v4716_v1 = vpop.f32.mrb[10].mxu0  ;;  %v4838_v60 = vpop.f32.mrb[33].mxu1  ;;  %v6450_v25 = vsub.f32 %v4961_v58, %v4686_v46 }
 0x390   : > { %6357 = vst [vmem:[#allocation46_spill] sm:$0xff] %v4716_v1  ;;  %1811 = vst [vmem:[%s4642_s5 + $0xb8] sm:$0xff] %v4716_v1  ;;  %v4724_v3 = vpop.f32.mrb[11].mxu0  ;;  %v5066_v1 = vld [vmem:[%s4361_s15 + $0x120] sm:$0xff] }
 0x391   : > { %6358 = vst [vmem:[#allocation47_spill] sm:$0xff] %v4724_v3  ;;  %1810 = vst [vmem:[%s4642_s5 + $0xb0] sm:$0xff] %v4724_v3  ;;  %v5144_v3 = vld [vmem:[%s4361_s15 + $0x1a8] sm:$0xff] }
 0x392   : > { %6381 = vst [vmem:[#allocation69_spill] sm:$0xff] %v4838_v60  ;;  %1834 = vst [vmem:[%s4642_s5 + $0x170] sm:$0xff] %v4838_v60  ;;  %v4955_v60 = vld [vmem:[%s4361_s15 + $0xa0] sm:$0xff] }
 0x393   : > { %v4743_v9 = vpop.f32.mrb[12].mxu0  ;;  %6402 = vst [vmem:[#allocation90_spill] sm:$0xff] %v4955_v60  ;;  %v5063_v60 = vld [vmem:[%s4361_s15 + $0xf8] sm:$0xff]  ;;  %6415 = vst [vmem:[#allocation103_spill] sm:$0xff] %v5066_v1 }
 0x394   : > { %6361 = vst [vmem:[#allocation50_spill] sm:$0xff] %v4743_v9  ;;  %1813 = vst [vmem:[%s4642_s5 + $0xc8] sm:$0xff] %v4743_v9  ;;  %v4751_v11 = vpop.f32.mrb[13].mxu0  ;;  %v5106_v9 = vld [vmem:[%s4361_s15 + $0x158] sm:$0xff] }
 0x395   : > { %6363 = vst [vmem:[#allocation52_spill] sm:$0xff] %v4751_v11  ;;  %1812 = vst [vmem:[%s4642_s5 + $0xc0] sm:$0xff] %v4751_v11  ;;  %v5100_v11 = vld [vmem:[%s4361_s15 + $0x188] sm:$0xff] }
 0x396   : > { %6414 = vst [vmem:[#allocation102_spill] sm:$0xff] %v5063_v60 }
 0x397   : > { %v4768_v16 = vpop.f32.mrb[14].mxu0 }
 0x398   : > { %6364 = vst [vmem:[#allocation53_spill] sm:$0xff] %v4768_v16  ;;  %1815 = vst [vmem:[%s4642_s5 + $0xd8] sm:$0xff] %v4768_v16  ;;  %v4776_v18 = vpop.f32.mrb[15].mxu0 }
 0x399   : > { %6366 = vst [vmem:[#allocation55_spill] sm:$0xff] %v4776_v18  ;;  %v3714_v20 = vpop.eup %3713  ;;  %1814 = vst [vmem:[%s4642_s5 + $0xd0] sm:$0xff] %v4776_v18  ;;  %v5136_v18 = vld [vmem:[%s4361_s15 + $0x198] sm:$0xff] }
 0x39a   : > { %v1056_v22 = vsub.f32 1.0, %v3714_v20  ;;  %v1859_v23 = vrot.slane %v3714_v20, %v1858_v14  ;;  %1055 = vst.msk [vmem:[%s6369_s28] sm:$0xf] %vm1054_vm9, %v3714_v20  ;;  %vm2537_vm9 = vcmask 1048512  }
 0x39b   : > { %v4796_v26 = vpop.f32.mrb[16].mxu0 }
 0x39c   : > { %6371 = vst [vmem:[#allocation59_spill] sm:$0xff] %v4796_v26  ;;  %1058 = vrot.lane.b32.xlu1 %v1056_v22, %s3989_s11  ;;  %v1867_v28 = vrot.slane %v1859_v23, %v1858_v14  ;;  %v1860_v29 = vcombine.high %v1859_v23, %v1859_v23  ;;  %1817 = vst [vmem:[%s4642_s5 + $0xe8] sm:$0xff] %v4796_v26  ;;  %v4804_v30 = vpop.f32.mrb[17].mxu0 }
 0x39d   : > { %6373 = vst [vmem:[#allocation61_spill] sm:$0xff] %v4804_v30  ;;  %1816 = vst [vmem:[%s4642_s5 + $0xe0] sm:$0xff] %v4804_v30  ;;  %v5156_v30 = vld [vmem:[%s4361_s15 + $0x1b8] sm:$0xff] }
 0x39e   : > { %v1944_v33 = vrot.slane %v1867_v28, %v1943_v24  ;;  %v1874_v34 = vrot.slane %v1860_v29, %v1858_v14  ;;  %v1875_v47 = vcombine.high %v1867_v28, %v1867_v28  ;;  %6430 = vst [vmem:[#allocation62_spill] sm:$0xff] %v5156_v30 }
 0x39f   : > { %v4820_v49 = vpop.f32.mrb[18].mxu0 }
 0x3a0   : > { %6377 = vst [vmem:[#allocation65_spill] sm:$0xff] %v4820_v49  ;;  %1958 = vperm.xlu1 %3708, %v1944_v33   ;;  %v1948_v51 = vrot.slane %v1874_v34, %v1943_v24  ;;  %1819 = vst [vmem:[%s4642_s5 + $0xf8] sm:$0xff] %v4820_v49  ;;  %v4828_v52 = vpop.f32.mrb[19].mxu0  ;;  %v1952_v61 = vrot.slane %v1875_v47, %v1943_v24  ;;  %v1876_v62 = vcombine.high %v1874_v34, %v1874_v34  ;;  %v4975_v49 = vld [vmem:[%s4361_s15 + $0xb0] sm:$0xff] }
 0x3a1   : > { %6379 = vst [vmem:[#allocation67_spill] sm:$0xff] %v4828_v52  ;;  %1818 = vst [vmem:[%s4642_s5 + $0xf0] sm:$0xff] %v4828_v52  ;;  %v5112_v52 = vld [vmem:[%s4361_s15 + $0x168] sm:$0xff] }
 0x3a2   : > { %1962 = vperm.xlu0 %3709, %v1948_v51   ;;  %v1956_v20 = vrot.slane %v1876_v62, %v1943_v24  ;;  %6405 = vst [vmem:[#allocation93_spill] sm:$0xff] %v4975_v49  ;;  %v5083_v49 = vld [vmem:[%s4361_s15 + $0xf0] sm:$0xff] }
 0x3a3   : > { %v4842_v6 = vpop.f32.mrb[20].mxu0  ;;  %6417 = vst [vmem:[#allocation105_spill] sm:$0xff] %v5083_v49 }
 0x3a4   : > { %6382 = vst [vmem:[#allocation70_spill] sm:$0xff] %v4842_v6  ;;  %1966 = vperm.xlu1 %3708, %v1952_v61   ;;  %1837 = vst [vmem:[%s4642_s5 + $0x188] sm:$0xff] %v4842_v6  ;;  %v4846_v14 = vpop.f32.mrb[21].mxu0  ;;  %v4952_v6 = vld [vmem:[%s4361_s15 + $0xa8] sm:$0xff] }
 0x3a5   : > { %6383 = vst [vmem:[#allocation71_spill] sm:$0xff] %v4846_v14  ;;  %1836 = vst [vmem:[%s4642_s5 + $0x180] sm:$0xff] %v4846_v14  ;;  %v4949_v14 = vld [vmem:[%s4361_s15 + $0x40] sm:$0xff] }
 0x3a7   : > { %v4850_v22 = vpop.f32.mrb[22].mxu0 }
 0x3a8   : > { %6384 = vst [vmem:[#allocation72_spill] sm:$0xff] %v4850_v22  ;;  %1970 = vperm.xlu1 %3708, %v1956_v20   ;;  %1839 = vst [vmem:[%s4642_s5 + $0x198] sm:$0xff] %v4850_v22  ;;  %v4854_v23 = vpop.f32.mrb[23].mxu0  ;;  %v4946_v22 = vld [vmem:[%s4361_s15 + $0x48] sm:$0xff] }
 0x3a9   : > { %6385 = vst [vmem:[#allocation73_spill] sm:$0xff] %v4854_v23  ;;  %1838 = vst [vmem:[%s4642_s5 + $0x190] sm:$0xff] %v4854_v23  ;;  %v4943_v23 = vld [vmem:[%s4361_s15 + $0x90] sm:$0xff] }
 0x3ab   : > { %v4858_v28 = vpop.f32.mrb[24].mxu0  ;;  %v6438_v26 = vld [vmem:[#allocation70_spill] sm:$0xff] }
 0x3ac   : > { %6386 = vst [vmem:[#allocation74_spill] sm:$0xff] %v4858_v28  ;;  %1841 = vst [vmem:[%s4642_s5 + $0x1a8] sm:$0xff] %v4858_v28  ;;  %v4862_v29 = vpop.f32.mrb[25].mxu0  ;;  %v4940_v28 = vld [vmem:[%s4361_s15 + $0x98] sm:$0xff] }
 0x3ad   : > { %6387 = vst [vmem:[#allocation75_spill] sm:$0xff] %v4862_v29  ;;  %1840 = vst [vmem:[%s4642_s5 + $0x1a0] sm:$0xff] %v4862_v29  ;;  %v4937_v29 = vld [vmem:[%s4361_s15 + $0x80] sm:$0xff] }
 0x3ae   : > { %6401 = vst [vmem:[#allocation89_spill] sm:$0xff] %v4940_v28  ;;  %v5043_v28 = vld [vmem:[%s4361_s15 + $0xe0] sm:$0xff] }
 0x3af   : > { %v4866_v24 = vpop.f32.mrb[26].mxu0  ;;  %6413 = vst [vmem:[#allocation101_spill] sm:$0xff] %v5043_v28  ;;  %v6440_v16 = vld [vmem:[#allocation72_spill] sm:$0xff] }
 0x3b0   : > { %6388 = vst [vmem:[#allocation76_spill] sm:$0xff] %v4866_v24  ;;  %1843 = vst [vmem:[%s4642_s5 + $0x1b8] sm:$0xff] %v4866_v24  ;;  %v4870_v33 = vpop.f32.mrb[27].mxu0  ;;  %v4934_v24 = vld [vmem:[%s4361_s15 + $0x88] sm:$0xff] }
 0x3b1   : > { %6389 = vst [vmem:[#allocation77_spill] sm:$0xff] %v4870_v33  ;;  %1842 = vst [vmem:[%s4642_s5 + $0x1b0] sm:$0xff] %v4870_v33  ;;  %v4928_v33 = vld [vmem:[%s4361_s15 + $0x30] sm:$0xff] }
 0x3b2   : > { %6400 = vst [vmem:[#allocation88_spill] sm:$0xff] %v4934_v24  ;;  %v5049_v24 = vld [vmem:[%s4361_s15 + $0x110] sm:$0xff] }
 0x3b3   : > { %v4874_v34 = vpop.f32.mrb[28].mxu0  ;;  %v6442_v49 = vld [vmem:[#allocation74_spill] sm:$0xff] }
 0x3b4   : > { %6390 = vst [vmem:[#allocation78_spill] sm:$0xff] %v4874_v34  ;;  %1845 = vst [vmem:[%s4642_s5 + $0x1c8] sm:$0xff] %v4874_v34  ;;  %v4878_v47 = vpop.f32.mrb[29].mxu0  ;;  %v4922_v34 = vld [vmem:[%s4361_s15 + $0x20] sm:$0xff] }
 0x3b5   : > { %6391 = vst [vmem:[#allocation79_spill] sm:$0xff] %v4878_v47  ;;  %1844 = vst [vmem:[%s4642_s5 + $0x1c0] sm:$0xff] %v4878_v47 }
 0x3b7   : > { %v4882_v51 = vpop.f32.mrb[30].mxu0 }
 0x3b8   : > { %6392 = vst [vmem:[#allocation80_spill] sm:$0xff] %v4882_v51  ;;  %1847 = vst [vmem:[%s4642_s5 + $0x1d8] sm:$0xff] %v4882_v51  ;;  %v4886_v61 = vpop.f32.mrb[31].mxu0  ;;  %v4916_v51 = vld [vmem:[%s4361_s15 + $0x10] sm:$0xff] }
 0x3b9   : > { %6393 = vst [vmem:[#allocation81_spill] sm:$0xff] %v4886_v61  ;;  %1846 = vst [vmem:[%s4642_s5 + $0x1d0] sm:$0xff] %v4886_v61  ;;  %v4910_v61 = vld [vmem:[%s4361_s15] sm:$0xff]  ;;  %v6449_v59 = vsub.f32 %v4916_v51, %v6448_v41 }
 0x3ba   : > { %v6447_v21 = vsub.f32 %v4910_v61, %v4646_v36  ;;  %v6453_v61 = vld [vmem:[#allocation37_spill] sm:$0xff] }
 0x3bb   : > { %v4890_v62 = vpop.f32.mrb[32].mxu0  ;;  %v6458_v30 = vld [vmem:[#allocation78_spill] sm:$0xff] }
 0x3bc   : > { %6394 = vst [vmem:[#allocation82_spill] sm:$0xff] %v4890_v62  ;;  %1849 = vst [vmem:[%s4642_s5 + $0x1e8] sm:$0xff] %v4890_v62  ;;  %v4894_v20 = vpop.f32.mrb[33].mxu0  ;;  %v4907_v62 = vld [vmem:[%s4361_s15 + $0x8] sm:$0xff] }
 0x3bd   : > { %6395 = vst [vmem:[#allocation83_spill] sm:$0xff] %v4894_v20  ;;  %1848 = vst [vmem:[%s4642_s5 + $0x1e0] sm:$0xff] %v4894_v20  ;;  %v4913_v20 = vld [vmem:[%s4361_s15 + $0x18] sm:$0xff]  ;;  %v6446_v48 = vsub.f32 %v4907_v62, %v4639_v35  ;;  %v5211_v62 = vld [vmem:[%s4361_s15 + $0x1c0] sm:$0xff] }
 0x3be   : > { %6398 = vst [vmem:[#allocation86_spill] sm:$0xff] %v4913_v20  ;;  %v4992_v20 = vld [vmem:[%s4361_s15 + $0x60] sm:$0xff] }
 0x3bf   : > { %v4898_v63 = vpop.f32.mrb[34].mxu0 }
 0x3c0   : > { %6396 = vst [vmem:[#allocation84_spill] sm:$0xff] %v4898_v63  ;;  %1851 = vst [vmem:[%s4642_s5 + $0x1f8] sm:$0xff] %v4898_v63  ;;  %v4902_v7 = vpop.f32.mrb[35].mxu0  ;;  %v4919_v63 = vld [vmem:[%s4361_s15 + $0x28] sm:$0xff] }
 0x3c1   : > { %6397 = vst [vmem:[#allocation85_spill] sm:$0xff] %v4902_v7  ;;  %1850 = vst [vmem:[%s4642_s5 + $0x1f0] sm:$0xff] %v4902_v7  ;;  %v4925_v7 = vld [vmem:[%s4361_s15 + $0x38] sm:$0xff] }
 0x3c2   : > { %6399 = vst [vmem:[#allocation87_spill] sm:$0xff] %v4925_v7  ;;  %v5009_v7 = vld [vmem:[%s4361_s15 + $0xd8] sm:$0xff] }
 0x3c3   : > { %6409 = vst [vmem:[#allocation97_spill] sm:$0xff] %v5009_v7  ;;  %v5123_v7 = vld [vmem:[%s4361_s15 + $0x160] sm:$0xff] }
 0x3c4   : > { %6422 = vst [vmem:[#allocation110_spill] sm:$0xff] %v5123_v7 }
 0x40e   : > { %v1059_v47 = vpop.permute.xlu1 %1058 }
 0x40f   : > { %1062 = vst.msk [vmem:[%s6369_s28] sm:$0xf] %vm1061_vm10, %v1059_v47  ;;  %v4958_v47 = vld [vmem:[%s4361_s15 + $0x58] sm:$0xff]  ;;  %vm2776_vm10 = vcmask 1041409  }
 0x410   : > { %6403 = vst [vmem:[#allocation91_spill] sm:$0xff] %v4958_v47  ;;  %v5026_v47 = vld [vmem:[%s4361_s15 + $0x108] sm:$0xff] }
 0x41f   : > { %v5189_v37 = vpop.permute.xlu1 %1958 }
 0x420   : > { %v1974_v1 = vmul.f32 %v5189_v37, %v6446_v48  ;;  %v1973_v4 = vmul.f32 %v5189_v37, %v6447_v21  ;;  %v1975_v28 = vmul.f32 %v5189_v37, %v6449_v59  ;;  %v1983_v10 = vmul.f32 %v5189_v37, %v6450_v25  ;;  %v5216_v48 = vld [vmem:[%s6451_s20] ss:$0 sm:$0xff]  ;;  %v6452_v21 = vld [vmem:[#allocation86_spill] sm:$0xff] }
 0x421   : > { %v6454_v19 = vsub.f32 %v6452_v21, %v6453_v61  ;;  %v6455_v59 = vsub.f32 %v4992_v20, %v4720_v2  ;;  %v6456_v25 = vsub.f32 %v4922_v34, %v4662_v40  ;;  %v1987_v17 = vmul.f32 %v5189_v37, %v6457_v38  ;;  %v5238_v21 = vld [vmem:[%s4361_s15 + $0x1d0] sm:$0xff]  ;;  %v5244_v7 = vpop.permute.xlu0 %1962 }
 0x422   : > { %v2037_v20 = vadd.f32 %v1973_v4, %v4646_v36  ;;  %v2047_v34 = vadd.f32 %v1983_v10, %v4686_v46 }
 0x423   : > { %v1976_v51 = vmul.f32 %v5189_v37, %v6454_v19  ;;  %v1985_v58 = vmul.f32 %v5189_v37, %v6455_v59  ;;  %v1977_v45 = vmul.f32 %v5189_v37, %v6456_v25  ;;  %v2038_v19 = vadd.f32 %v4639_v35, %v1974_v1  ;;  %v6459_v1 = vld [vmem:[#allocation79_spill] sm:$0xff] }
 0x424   : > { %v2039_v59 = vadd.f32 %v1975_v28, %v6448_v41  ;;  %v5250_v60 = vadd.f32 %v1987_v17, %v4734_v5  ;;  %v5256_v41 = vpop.permute.xlu1 %1966  ;;  %2101 = vst [vmem:[%s5260_s1] sm:$0xff] %v2037_v20  ;;  %2111 = vst [vmem:[%s5260_s1 + $0x50] sm:$0xff] %v2047_v34  ;;  %v2182_v17 = vmul.f32 %v5216_v48, %v2047_v34  ;;  %v5291_v34 = vld [vmem:[%s4361_s15 + $0x1e8] sm:$0xff]  ;;  %v5294_v5 = vld [vmem:[%s4361_s15 + $0x1e0] sm:$0xff] }
 0x425   : > { %v2040_v25 = vadd.f32 %v6453_v61, %v1976_v51  ;;  %v2049_v42 = vadd.f32 %v1985_v58, %v4720_v2  ;;  %v2041_v38 = vadd.f32 %v1977_v45, %v4662_v40  ;;  %v2173_v46 = vmul.f32 %v5216_v48, %v2038_v19  ;;  %2102 = vst [vmem:[%s5260_s1 + $0x8] sm:$0xff] %v2038_v19  ;;  %v6460_v45 = vld [vmem:[#allocation80_spill] sm:$0xff] }
 0x426   : > { %v2172_v40 = vmul.f32 %v5216_v48, %v2037_v20  ;;  %2103 = vst [vmem:[%s5260_s1 + $0x10] sm:$0xff] %v2039_v59  ;;  %v2174_v10 = vmul.f32 %v5216_v48, %v2039_v59  ;;  %2115 = vst [vmem:[%s5260_s1 + $0x70] sm:$0xff] %v5250_v60  ;;  %v6462_v28 = vsub.f32 %v4919_v63, %v4658_v39  ;;  %v6464_v19 = vld [vmem:[#allocation40_spill] sm:$0xff] }
 0x427   : > { %2104 = vst [vmem:[%s5260_s1 + $0x18] sm:$0xff] %v2040_v25  ;;  %2113 = vst [vmem:[%s5260_s1 + $0x60] sm:$0xff] %v2049_v42  ;;  %2238 = vadd.xlane.f32.xlu0 %v2173_v46  ;;  %v6463_v51 = vsub.f32 %v4937_v29, %v4694_v54  ;;  %v6465_v20 = vsub.f32 %v4928_v33, %v6464_v19  ;;  %v5297_v46 = vld [vmem:[%s4361_s15 + $0x1f8] sm:$0xff]  ;;  %v6466_v63 = vsub.f32 %v4943_v23, %v4702_v56  ;;  %v5316_v23 = vld [vmem:[%s4361_s15 + $0x1f0] sm:$0xff]  ;;  %s732_s15 = scalar_lea.vmem [#allocation16], %s3130_s22 }
 0x428   : > { %2105 = vst [vmem:[%s5260_s1 + $0x20] sm:$0xff] %v2041_v38  ;;  %2236 = vadd.xlane.f32.xlu1 %v2172_v40  ;;  %v1978_v61 = vmul.f32 %v5189_v37, %v6462_v28  ;;  %v6467_v28 = vld [vmem:[#allocation87_spill] sm:$0xff]  ;;  %v6470_v33 = vsub.f32 %v5026_v47, %v4741_v8  ;;  %v6471_v2 = vsub.f32 %v4949_v14, %v4678_v44 }
 0x429   : > { %v1989_v58 = vmul.f32 %v5244_v7, %v6463_v51  ;;  %v1979_v59 = vmul.f32 %v5189_v37, %v6465_v20  ;;  %v1991_v40 = vmul.f32 %v5244_v7, %v6466_v63  ;;  %v6468_v29 = vld [vmem:[#allocation39_spill] sm:$0xff]  ;;  %v6472_v47 = vsub.f32 %v5049_v24, %v4761_v13 }
 0x42a   : > { %v6469_v36 = vsub.f32 %v6467_v28, %v6468_v29  ;;  %v2006_v20 = vmul.f32 %v5256_v41, %v6470_v33  ;;  %v1981_v35 = vmul.f32 %v5189_v37, %v6471_v2  ;;  %v2042_v63 = vadd.f32 %v4658_v39, %v1978_v61  ;;  %v6473_v61 = vld [vmem:[#allocation82_spill] sm:$0xff] }
 0x42b   : > { %v2053_v28 = vadd.f32 %v1989_v58, %v4694_v54  ;;  %v2007_v33 = vmul.f32 %v5256_v41, %v6472_v47  ;;  %v2055_v14 = vadd.f32 %v1991_v40, %v4702_v56  ;;  %v6474_v58 = vld [vmem:[#allocation83_spill] sm:$0xff]  ;;  %2256 = vadd.xlane.f32.xlu0 %v2182_v17  ;;  %v6476_v56 = vld [vmem:[#allocation85_spill] sm:$0xff]  ;;  %v2176_v40 = vmul.f32 %v5216_v48, %v2041_v38  ;;  %v6481_v47 = vld [vmem:[#allocation42_spill] sm:$0xff] }
 0x42c   : > { %v1980_v51 = vmul.f32 %v5189_v37, %v6469_v36  ;;  %v2043_v36 = vadd.f32 %v1979_v59, %v6464_v19  ;;  %v2070_v4 = vadd.f32 %v4741_v8, %v2006_v20  ;;  %v2045_v39 = vadd.f32 %v1981_v35, %v4678_v44  ;;  %v6475_v19 = vld [vmem:[#allocation84_spill] sm:$0xff]  ;;  %2240 = vadd.xlane.f32.xlu1 %v2174_v10  ;;  %v6477_v17 = vld [vmem:[#allocation41_spill] sm:$0xff] }
 0x42d   : > { %2106 = vst [vmem:[%s5260_s1 + $0x28] sm:$0xff] %v2042_v63  ;;  %2117 = vst [vmem:[%s5260_s1 + $0x80] sm:$0xff] %v2053_v28  ;;  %v2175_v44 = vmul.f32 %v5216_v48, %v2040_v25  ;;  %v2184_v35 = vmul.f32 %v5216_v48, %v2049_v42  ;;  %v2071_v10 = vadd.f32 %v2007_v33, %v4761_v13  ;;  %v6480_v42 = vld [vmem:[#allocation91_spill] sm:$0xff]  ;;  %v6510_v54 = vld [vmem:[#allocation45_spill] sm:$0xff] }
 0x42e   : > { %v2044_v2 = vadd.f32 %v6468_v29, %v1980_v51  ;;  %2107 = vst [vmem:[%s5260_s1 + $0x30] sm:$0xff] %v2043_v36  ;;  %2119 = vst [vmem:[%s5260_s1 + $0x90] sm:$0xff] %v2055_v14  ;;  %v6478_v29 = vsub.f32 %v4946_v22, %v6477_v17  ;;  %v6479_v20 = vsub.f32 %v5046_v53, %v4755_v12 }
 0x42f   : > { %2134 = vst [vmem:[%s5260_s1 + $0x108] sm:$0xff] %v2070_v4  ;;  %2109 = vst [vmem:[%s5260_s1 + $0x40] sm:$0xff] %v2045_v39  ;;  %v6482_v38 = vsub.f32 %v6480_v42, %v6481_v47  ;;  %v6483_v24 = vsub.f32 %v4952_v6, %v4706_v57  ;;  %v6484_v22 = vsub.f32 %v4978_v27, %v4714_v0  ;;  %v6487_v42 = vld [vmem:[#allocation48_spill] sm:$0xff]  ;;  %2260 = vadd.xlane.f32.xlu0 %v2184_v35 }
 0x430   : > { %2108 = vst [vmem:[%s5260_s1 + $0x38] sm:$0xff] %v2044_v2  ;;  %v1982_v51 = vmul.f32 %v5189_v37, %v6478_v29  ;;  %v2008_v25 = vmul.f32 %v5256_v41, %v6479_v20  ;;  %v6485_v53 = vsub.f32 %v5052_v50, %v4766_v15  ;;  %v6486_v20 = vld [vmem:[#allocation96_spill] sm:$0xff]  ;;  %2242 = vadd.xlane.f32.xlu1 %v2175_v44  ;;  %2135 = vst [vmem:[%s5260_s1 + $0x110] sm:$0xff] %v2071_v10 }
 0x431   : > { %v1984_v59 = vmul.f32 %v5189_v37, %v6482_v38  ;;  %v1994_v13 = vmul.f32 %v5244_v7, %v6483_v24  ;;  %v1986_v33 = vmul.f32 %v5189_v37, %v6484_v22  ;;  %v6488_v38 = vsub.f32 %v6486_v20, %v6487_v42  ;;  %v6500_v20 = vld [vmem:[#allocation94_spill] sm:$0xff] }
 0x432   : > { %v2010_v29 = vmul.f32 %v5256_v41, %v6485_v53  ;;  %v2186_v6 = vmul.f32 %v5216_v48, %v5250_v60  ;;  %v2046_v27 = vadd.f32 %v6477_v17, %v1982_v51  ;;  %v2072_v24 = vadd.f32 %v4755_v12, %v2008_v25  ;;  %v6489_v17 = vld [vmem:[#allocation92_spill] sm:$0xff]  ;;  %v6490_v51 = vld [vmem:[#allocation46_spill] sm:$0xff]  ;;  %v6497_v53 = vld [vmem:[#allocation99_spill] sm:$0xff] }
 0x433   : > { %v1988_v8 = vmul.f32 %v5189_v37, %v6488_v38  ;;  %v2048_v50 = vadd.f32 %v6481_v47, %v1984_v59  ;;  %v2058_v22 = vadd.f32 %v4706_v57, %v1994_v13  ;;  %v2050_v37 = vadd.f32 %v4714_v0, %v1986_v33 }
 0x434   : > { %v2074_v44 = vadd.f32 %v4766_v15, %v2010_v29  ;;  %v2177_v35 = vmul.f32 %v5216_v48, %v2042_v63  ;;  %v2188_v60 = vmul.f32 %v5216_v48, %v2053_v28  ;;  %2110 = vst [vmem:[%s5260_s1 + $0x48] sm:$0xff] %v2046_v27  ;;  %2136 = vst [vmem:[%s5260_s1 + $0x118] sm:$0xff] %v2072_v24  ;;  %2244 = vadd.xlane.f32.xlu1 %v2176_v40  ;;  %v6498_v29 = vld [vmem:[#allocation51_spill] sm:$0xff] }
 0x435   : > { %v2052_v12 = vadd.f32 %v6487_v42, %v1988_v8  ;;  %v6491_v59 = vsub.f32 %v6489_v17, %v6490_v51  ;;  %v2178_v57 = vmul.f32 %v5216_v48, %v2043_v36  ;;  %v2190_v0 = vmul.f32 %v5216_v48, %v2055_v14  ;;  %2112 = vst [vmem:[%s5260_s1 + $0x58] sm:$0xff] %v2048_v50  ;;  %v6492_v14 = vld [vmem:[#allocation88_spill] sm:$0xff]  ;;  %v6493_v8 = vld [vmem:[#allocation43_spill] sm:$0xff]  ;;  %v6501_v42 = vld [vmem:[#allocation50_spill] sm:$0xff] }
 0x436   : > { %v5397_v15 = vmul.f32 %v5216_v48, %v2044_v2  ;;  %v5400_v63 = vmul.f32 %v5216_v48, %v2070_v4  ;;  %2122 = vst [vmem:[%s5260_s1 + $0xa8] sm:$0xff] %v2058_v22  ;;  %2114 = vst [vmem:[%s5260_s1 + $0x68] sm:$0xff] %v2050_v37  ;;  %2264 = vadd.xlane.f32.xlu0 %v2186_v6  ;;  %v5407_v28 = vmul.f32 %v5216_v48, %v2045_v39  ;;  %v6495_v4 = vld [vmem:[#allocation56_spill] sm:$0xff]  ;;  %v6503_v17 = vld [vmem:[#allocation89_spill] sm:$0xff] }
 0x437   : > { %v1996_v25 = vmul.f32 %v5244_v7, %v6491_v59  ;;  %2138 = vst [vmem:[%s5260_s1 + $0x128] sm:$0xff] %v2074_v44  ;;  %2116 = vst [vmem:[%s5260_s1 + $0x78] sm:$0xff] %v2052_v12  ;;  %v6494_v2 = vsub.f32 %v6492_v14, %v6493_v8  ;;  %v6496_v13 = vsub.f32 %v5069_v31, %v6495_v4 }
 0x438   : > { %v6499_v40 = vsub.f32 %v6497_v53, %v6498_v29  ;;  %v6502_v38 = vsub.f32 %v6500_v20, %v6501_v42  ;;  %v5432_v31 = vmul.f32 %v5216_v48, %v2071_v10  ;;  %v6509_v20 = vld [vmem:[#allocation90_spill] sm:$0xff]  ;;  %2246 = vadd.xlane.f32.xlu1 %v2177_v35  ;;  %v5476_v35 = vmul.f32 %v5216_v48, %v2058_v22  ;;  %v6515_v22 = vld [vmem:[#allocation53_spill] sm:$0xff] }
 0x439   : > { %v2060_v36 = vadd.f32 %v6490_v51, %v1996_v25  ;;  %v1990_v47 = vmul.f32 %v5244_v7, %v6494_v2  ;;  %v2012_v33 = vmul.f32 %v5256_v41, %v6496_v13  ;;  %v6504_v51 = vld [vmem:[#allocation44_spill] sm:$0xff]  ;;  %v6506_v2 = vld [vmem:[#allocation106_spill] sm:$0xff] }
 0x43a   : > { %v2005_v39 = vmul.f32 %v5256_v41, %v6499_v40  ;;  %v1998_v6 = vmul.f32 %v5244_v7, %v6502_v38  ;;  %v6505_v59 = vsub.f32 %v6503_v17, %v6504_v51  ;;  %v6507_v13 = vld [vmem:[#allocation58_spill] sm:$0xff]  ;;  %v6511_v38 = vsub.f32 %v6509_v20, %v6510_v54  ;;  %2268 = vadd.xlane.f32.xlu0 %v2188_v60 }
 0x43b   : > { %2124 = vst [vmem:[%s5260_s1 + $0xb8] sm:$0xff] %v2060_v36  ;;  %v5436_v14 = vadd.f32 %v6493_v8, %v1990_v47  ;;  %v6508_v53 = vsub.f32 %v6506_v2, %v6507_v13  ;;  %v5459_v2 = vmul.f32 %v5216_v48, %v2046_v27  ;;  %v5479_v27 = vmul.f32 %v5216_v48, %v2050_v37 }
 0x43c   : > { %v1992_v25 = vmul.f32 %v5244_v7, %v6505_v59  ;;  %v1993_v17 = vmul.f32 %v5244_v7, %v6511_v38  ;;  %v5447_v59 = vadd.f32 %v6495_v4, %v2012_v33  ;;  %v5450_v10 = vadd.f32 %v2005_v39, %v6498_v29  ;;  %v6524_v38 = vld [vmem:[#allocation100_spill] sm:$0xff]  ;;  %2248 = vadd.xlane.f32.xlu1 %v2178_v57 }
 0x43d   : > { %v2014_v40 = vmul.f32 %v5256_v41, %v6508_v53  ;;  %v5453_v8 = vadd.f32 %v6501_v42, %v1998_v6  ;;  %2118 = vst [vmem:[%s5260_s1 + $0x88] sm:$0xff] %v5436_v14  ;;  %v5470_v29 = vmul.f32 %v5216_v48, %v2072_v24  ;;  %v5473_v39 = vmul.f32 %v5216_v48, %v2048_v50  ;;  %v6514_v50 = vld [vmem:[#allocation97_spill] sm:$0xff]  ;;  %v6517_v42 = vld [vmem:[#allocation103_spill] sm:$0xff]  ;;  %v6518_v6 = vld [vmem:[#allocation54_spill] sm:$0xff] }
 0x43e   : > { %v5456_v47 = vadd.f32 %v6504_v51, %v1992_v25  ;;  %v5467_v33 = vadd.f32 %v1993_v17, %v6510_v54  ;;  %2140 = vst [vmem:[%s5260_s1 + $0x138] sm:$0xff] %v5447_v59  ;;  %2133 = vst [vmem:[%s5260_s1 + $0x100] sm:$0xff] %v5450_v10  ;;  %v5490_v54 = vmul.f32 %v5216_v48, %v2074_v44  ;;  %v6522_v53 = vld [vmem:[#allocation47_spill] sm:$0xff]  ;;  %2272 = vadd.xlane.f32.xlu0 %v2190_v0 }
 0x43f   : > { %v5464_v4 = vadd.f32 %v6507_v13, %v2014_v40  ;;  %2126 = vst [vmem:[%s5260_s1 + $0xc8] sm:$0xff] %v5453_v8  ;;  %v5493_v24 = vmul.f32 %v5216_v48, %v2052_v12  ;;  %v6516_v37 = vsub.f32 %v6514_v50, %v6515_v22  ;;  %v6519_v51 = vsub.f32 %v6517_v42, %v6518_v6  ;;  %v6521_v13 = vld [vmem:[#allocation93_spill] sm:$0xff]  ;;  %v6525_v17 = vld [vmem:[#allocation59_spill] sm:$0xff]  ;;  %v6527_v42 = vld [vmem:[#allocation104_spill] sm:$0xff] }
 0x440   : > { %6513 = vst [vmem:[#allocation72_spill] sm:$0xff] %v5467_v33  ;;  %2120 = vst [vmem:[%s5260_s1 + $0x98] sm:$0xff] %v5456_v47  ;;  %v6520_v44 = vsub.f32 %v5106_v9, %v6429_v32  ;;  %v6523_v40 = vsub.f32 %v6521_v13, %v6522_v53  ;;  %v6526_v50 = vsub.f32 %v6524_v38, %v6525_v17  ;;  %v6530_v13 = vld [vmem:[#allocation64_spill] sm:$0xff]  ;;  %2250 = vadd.xlane.f32.xlu1 %v5397_v15 }
 0x441   : > { %6512 = vst [vmem:[#allocation70_spill] sm:$0xff] %v5464_v4  ;;  %2142 = vst [vmem:[%s5260_s1 + $0x148] sm:$0xff] %v5464_v4  ;;  %v2000_v60 = vmul.f32 %v5244_v7, %v6516_v37  ;;  %v2009_v25 = vmul.f32 %v5256_v41, %v6519_v51  ;;  %v6541_v15 = vsub.f32 %v5100_v11, %v6438_v26 }
 0x442   : > { %2121 = vst [vmem:[%s5260_s1 + $0xa0] sm:$0xff] %v5467_v33  ;;  %v2016_v12 = vmul.f32 %v5256_v41, %v6520_v44  ;;  %v1995_v20 = vmul.f32 %v5244_v7, %v6523_v40  ;;  %v2002_v37 = vmul.f32 %v5244_v7, %v6526_v50  ;;  %v6528_v33 = vld [vmem:[#allocation57_spill] sm:$0xff]  ;;  %v6531_v40 = vsub.f32 %v5112_v52, %v6530_v13 }
 0x443   : > { %v6529_v51 = vsub.f32 %v6527_v42, %v6528_v33  ;;  %v5524_v9 = vadd.f32 %v6515_v22, %v2000_v60  ;;  %v2073_v44 = vadd.f32 %v2009_v25, %v6518_v6  ;;  %v5535_v22 = vpop.permute.xlu1 %1970  ;;  %v5538_v60 = vmul.f32 %v5216_v48, %v2060_v36  ;;  %v6532_v6 = vld [vmem:[#allocation95_spill] sm:$0xff]  ;;  %v6533_v25 = vld [vmem:[#allocation52_spill] sm:$0xff]  ;;  %2302 = vadd.xlane.f32.xlu0 %v5400_v63 }
 0x444   : > { %v2018_v38 = vmul.f32 %v5256_v41, %v6531_v40  ;;  %v2080_v50 = vadd.f32 %v6429_v32, %v2016_v12  ;;  %v2059_v42 = vadd.f32 %v1995_v20, %v6522_v53  ;;  %v2066_v57 = vadd.f32 %v6525_v17, %v2002_v37  ;;  %2252 = vadd.xlane.f32.xlu1 %v5407_v28 }
 0x445   : > { %v2011_v4 = vmul.f32 %v5256_v41, %v6529_v51  ;;  %2128 = vst [vmem:[%s5260_s1 + $0xd8] sm:$0xff] %v5524_v9  ;;  %v5543_v52 = vmul.f32 %v5216_v48, %v2073_v44  ;;  %2137 = vst [vmem:[%s5260_s1 + $0x120] sm:$0xff] %v2073_v44  ;;  %v6534_v12 = vsub.f32 %v6532_v6, %v6533_v25  ;;  %v6535_v51 = vld [vmem:[#allocation102_spill] sm:$0xff]  ;;  %v6536_v44 = vld [vmem:[#allocation65_spill] sm:$0xff] }
 0x446   : > { %v2082_v32 = vadd.f32 %v6530_v13, %v2018_v38  ;;  %2144 = vst [vmem:[%s5260_s1 + $0x158] sm:$0xff] %v2080_v50  ;;  %2123 = vst [vmem:[%s5260_s1 + $0xb0] sm:$0xff] %v2059_v42  ;;  %v5557_v36 = vmul.f32 %v5216_v48, %v2059_v42  ;;  %v6537_v13 = vsub.f32 %v6535_v51, %v6536_v44  ;;  %v6538_v38 = vld [vmem:[#allocation107_spill] sm:$0xff] }
 0x447   : > { %v2075_v0 = vadd.f32 %v2011_v4, %v6528_v33  ;;  %v1997_v53 = vmul.f32 %v5244_v7, %v6534_v12  ;;  %v5552_v4 = vmul.f32 %v5216_v48, %v2080_v50  ;;  %2130 = vst [vmem:[%s5260_s1 + $0xe8] sm:$0xff] %v2066_v57  ;;  %v5561_v33 = vmul.f32 %v5216_v48, %v2066_v57  ;;  %v6539_v50 = vld [vmem:[#allocation60_spill] sm:$0xff] }
 0x448   : > { %v5570_v17 = vmul.f32 %v5216_v48, %v2082_v32  ;;  %2146 = vst [vmem:[%s5260_s1 + $0x168] sm:$0xff] %v2082_v32  ;;  %v2004_v40 = vmul.f32 %v5244_v7, %v6537_v13  ;;  %v6540_v42 = vsub.f32 %v6538_v38, %v6539_v50  ;;  %v2022_v63 = vmul.f32 %v5535_v22, %v6541_v15  ;;  %v6543_v32 = vld [vmem:[#allocation55_spill] sm:$0xff]  ;;  %v6546_v13 = vld [vmem:[#allocation109_spill] sm:$0xff] }
 0x449   : > { %v5564_v20 = vmul.f32 %v5216_v48, %v2075_v0  ;;  %2139 = vst [vmem:[%s5260_s1 + $0x130] sm:$0xff] %v2075_v0  ;;  %v2061_v37 = vadd.f32 %v1997_v53, %v6533_v25  ;;  %v6542_v0 = vld [vmem:[#allocation98_spill] sm:$0xff]  ;;  %v6545_v12 = vsub.f32 %v5136_v18, %v6440_v16  ;;  %v6547_v38 = vld [vmem:[#allocation63_spill] sm:$0xff]  ;;  %2304 = vadd.xlane.f32.xlu0 %v5432_v31 }
 0x44a   : > { %v2013_v57 = vmul.f32 %v5256_v41, %v6540_v42  ;;  %v6544_v6 = vsub.f32 %v6542_v0, %v6543_v32  ;;  %v2068_v11 = vadd.f32 %v6536_v44, %v2004_v40  ;;  %v6548_v42 = vsub.f32 %v6546_v13, %v6547_v38  ;;  %v6554_v13 = vld [vmem:[#allocation76_spill] sm:$0xff]  ;;  %2254 = vadd.xlane.f32.xlu1 %v5459_v2 }
 0x44b   : > { %v2024_v53 = vmul.f32 %v5535_v22, %v6545_v12  ;;  %2125 = vst [vmem:[%s5260_s1 + $0xc0] sm:$0xff] %v2061_v37  ;;  %v5596_v51 = vmul.f32 %v5216_v48, %v2061_v37  ;;  %v6549_v0 = vsub.f32 %v5144_v3, %v6442_v49  ;;  %v2086_v37 = vadd.f32 %v6438_v26, %v2022_v63  ;;  %v6550_v63 = vld [vmem:[#allocation101_spill] sm:$0xff] }
 0x44c   : > { %v1999_v25 = vmul.f32 %v5244_v7, %v6544_v6  ;;  %v2015_v15 = vmul.f32 %v5256_v41, %v6548_v42  ;;  %v2077_v6 = vadd.f32 %v2013_v57, %v6539_v50  ;;  %2132 = vst [vmem:[%s5260_s1 + $0xf8] sm:$0xff] %v2068_v11  ;;  %v5615_v3 = vmul.f32 %v5216_v48, %v2068_v11  ;;  %v6553_v11 = vld [vmem:[#allocation62_spill] sm:$0xff] }
 0x44d   : > { %v2026_v18 = vmul.f32 %v5535_v22, %v6549_v0  ;;  %v2088_v44 = vadd.f32 %v6440_v16, %v2024_v53  ;;  %2150 = vst [vmem:[%s5260_s1 + $0x188] sm:$0xff] %v2086_v37  ;;  %v5625_v16 = vmul.f32 %v5216_v48, %v2086_v37  ;;  %2306 = vadd.xlane.f32.xlu0 %v5470_v29 }
 0x44e   : > { %v2063_v12 = vadd.f32 %v1999_v25, %v6543_v32  ;;  %v2079_v40 = vadd.f32 %v2015_v15, %v6547_v38  ;;  %v5620_v26 = vmul.f32 %v5216_v48, %v2077_v6  ;;  %2141 = vst [vmem:[%s5260_s1 + $0x140] sm:$0xff] %v2077_v6  ;;  %v6551_v32 = vld [vmem:[#allocation61_spill] sm:$0xff]  ;;  %v6555_v38 = vsub.f32 %v6553_v11, %v6554_v13  ;;  %v6558_v6 = vld [vmem:[#allocation66_spill] sm:$0xff] }
 0x44f   : > { %v2090_v50 = vadd.f32 %v6442_v49, %v2026_v18  ;;  %2152 = vst [vmem:[%s5260_s1 + $0x198] sm:$0xff] %v2088_v44  ;;  %v5633_v31 = vmul.f32 %v5216_v48, %v2088_v44  ;;  %v6552_v25 = vsub.f32 %v6550_v63, %v6551_v32  ;;  %v6556_v15 = vsub.f32 %v5208_v55, %v6458_v30  ;;  %v6557_v18 = vld [vmem:[#allocation110_spill] sm:$0xff]  ;;  %v6562_v63 = vld [vmem:[#allocation67_spill] sm:$0xff] }
 0x450   : > { %2127 = vst [vmem:[%s5260_s1 + $0xd0] sm:$0xff] %v2063_v12  ;;  %v5629_v28 = vmul.f32 %v5216_v48, %v2063_v12  ;;  %v5636_v57 = vmul.f32 %v5216_v48, %v2079_v40  ;;  %2143 = vst [vmem:[%s5260_s1 + $0x150] sm:$0xff] %v2079_v40  ;;  %v2028_v42 = vmul.f32 %v5535_v22, %v6555_v38  ;;  %2258 = vadd.xlane.f32.xlu1 %v5473_v39  ;;  %v6572_v39 = vld [vmem:[#allocation108_spill] sm:$0xff] }
 0x451   : > { %2154 = vst [vmem:[%s5260_s1 + $0x1a8] sm:$0xff] %v2090_v50  ;;  %v5641_v49 = vmul.f32 %v5216_v48, %v2090_v50  ;;  %v2001_v53 = vmul.f32 %v5244_v7, %v6552_v25  ;;  %v2030_v0 = vmul.f32 %v5535_v22, %v6556_v15  ;;  %v6559_v37 = vsub.f32 %v6557_v18, %v6558_v6  ;;  %v6561_v50 = vld [vmem:[#allocation105_spill] sm:$0xff] }
 0x452   : > { %v6560_v44 = vsub.f32 %v5235_v43, %v6460_v45  ;;  %v6563_v25 = vsub.f32 %v6561_v50, %v6562_v63  ;;  %v2092_v38 = vadd.f32 %v6554_v13, %v2028_v42  ;;  %v6564_v43 = vsub.f32 %v5291_v34, %v6473_v61  ;;  %v6565_v13 = vld [vmem:[#allocation112_spill] sm:$0xff]  ;;  %2278 = vadd.xlane.f32.xlu0 %v5476_v35 }
 0x453   : > { %v2017_v12 = vmul.f32 %v5256_v41, %v6559_v37  ;;  %v2065_v55 = vadd.f32 %v2001_v53, %v6551_v32  ;;  %v2094_v18 = vadd.f32 %v6458_v30, %v2030_v0  ;;  %v6566_v30 = vld [vmem:[#allocation69_spill] sm:$0xff] }
 0x454   : > { %v2032_v40 = vmul.f32 %v5535_v22, %v6560_v44  ;;  %v2003_v11 = vmul.f32 %v5244_v7, %v6563_v25  ;;  %v2034_v15 = vmul.f32 %v5535_v22, %v6564_v43  ;;  %2156 = vst [vmem:[%s5260_s1 + $0x1b8] sm:$0xff] %v2092_v38  ;;  %v5685_v34 = vmul.f32 %v5216_v48, %v2092_v38  ;;  %v6570_v25 = vld [vmem:[#allocation68_spill] sm:$0xff]  ;;  %v6573_v38 = vld [vmem:[#allocation71_spill] sm:$0xff] }
 0x455   : > { %v2081_v7 = vadd.f32 %v2017_v12, %v6558_v6  ;;  %2129 = vst [vmem:[%s5260_s1 + $0xe0] sm:$0xff] %v2065_v55  ;;  %v5681_v32 = vmul.f32 %v5216_v48, %v2065_v55  ;;  %v6567_v42 = vsub.f32 %v6565_v13, %v6566_v30  ;;  %2158 = vst [vmem:[%s5260_s1 + $0x1c8] sm:$0xff] %v2094_v18  ;;  %2262 = vadd.xlane.f32.xlu1 %v5479_v27 }
 0x456   : > { %v2096_v2 = vadd.f32 %v6460_v45, %v2032_v40  ;;  %v2067_v29 = vadd.f32 %v2003_v11, %v6562_v63  ;;  %v2098_v53 = vadd.f32 %v6473_v61, %v2034_v15  ;;  %v5694_v45 = vmul.f32 %v5216_v48, %v2094_v18  ;;  %v6569_v63 = vld [vmem:[#allocation111_spill] sm:$0xff]  ;;  %v6575_v15 = vld [vmem:[#allocation113_spill] sm:$0xff]  ;;  %2310 = vadd.xlane.f32.xlu0 %v5490_v54 }
 0x457   : > { %v2019_v0 = vmul.f32 %v5256_v41, %v6567_v42  ;;  %v5697_v6 = vmul.f32 %v5216_v48, %v2081_v7  ;;  %2145 = vst [vmem:[%s5260_s1 + $0x160] sm:$0xff] %v2081_v7  ;;  %v6568_v40 = vsub.f32 %v5316_v23, %v6476_v56  ;;  %v6571_v11 = vsub.f32 %v6569_v63, %v6570_v25  ;;  %v6576_v18 = vld [vmem:[#allocation73_spill] sm:$0xff]  ;;  %v6579_v23 = vld [vmem:[#allocation75_spill] sm:$0xff] }
 0x458   : > { %2160 = vst [vmem:[%s5260_s1 + $0x1d8] sm:$0xff] %v2096_v2  ;;  %v5702_v37 = vmul.f32 %v5216_v48, %v2096_v2  ;;  %2131 = vst [vmem:[%s5260_s1 + $0xf0] sm:$0xff] %v2067_v29  ;;  %v5706_v61 = vmul.f32 %v5216_v48, %v2067_v29  ;;  %v5712_v12 = vmul.f32 %v5216_v48, %v2098_v53  ;;  %v6578_v29 = vld [vmem:[#allocation114_spill] sm:$0xff]  ;;  %v6581_v42 = vld [vmem:[#allocation115_spill] sm:$0xff] }
 0x459   : > { %2162 = vst [vmem:[%s5260_s1 + $0x1e8] sm:$0xff] %v2098_v53  ;;  %v2083_v44 = vadd.f32 %v2019_v0, %v6566_v30  ;;  %v2035_v50 = vmul.f32 %v5535_v22, %v6568_v40  ;;  %v2020_v55 = vmul.f32 %v5256_v41, %v6571_v11  ;;  %v6574_v35 = vsub.f32 %v6572_v39, %v6573_v38  ;;  %v6582_v0 = vld [vmem:[#allocation77_spill] sm:$0xff] }
 0x45a   : > { %v6577_v7 = vsub.f32 %v6575_v15, %v6576_v18  ;;  %v6580_v53 = vsub.f32 %v6578_v29, %v6579_v23  ;;  %v6583_v40 = vsub.f32 %v6581_v42, %v6582_v0  ;;  %v6584_v11 = vsub.f32 %v5211_v62, %v6459_v1  ;;  %2266 = vadd.xlane.f32.xlu1 %v5493_v24 }
 0x45b   : > { %v2021_v43 = vmul.f32 %v5535_v22, %v6574_v35  ;;  %v5736_v30 = vmul.f32 %v5216_v48, %v2083_v44  ;;  %2147 = vst [vmem:[%s5260_s1 + $0x170] sm:$0xff] %v2083_v44  ;;  %v2099_v41 = vadd.f32 %v2035_v50, %v6476_v56  ;;  %v2084_v35 = vadd.f32 %v6570_v25, %v2020_v55 }
 0x45c   : > { %v2023_v2 = vmul.f32 %v5535_v22, %v6577_v7  ;;  %v2025_v13 = vmul.f32 %v5535_v22, %v6580_v53  ;;  %v2027_v63 = vmul.f32 %v5535_v22, %v6583_v40  ;;  %v2029_v39 = vmul.f32 %v5535_v22, %v6584_v11  ;;  %2282 = vadd.xlane.f32.xlu0 %v5538_v60  ;;  %v6590_v40 = vld [vmem:[#allocation72_spill] sm:$0xff] }
 0x45d   : > { %v2085_v15 = vadd.f32 %v2021_v43, %v6573_v38  ;;  %2163 = vst [vmem:[%s5260_s1 + $0x1f0] sm:$0xff] %v2099_v41  ;;  %v5756_v62 = vmul.f32 %v5216_v48, %v2099_v41  ;;  %2148 = vst [vmem:[%s5260_s1 + $0x178] sm:$0xff] %v2084_v35  ;;  %v5762_v55 = vmul.f32 %v5216_v48, %v2084_v35 }
 0x45e   : > { %v2087_v44 = vadd.f32 %v2023_v2, %v6576_v18  ;;  %v2089_v56 = vadd.f32 %v2025_v13, %v6579_v23  ;;  %v2091_v50 = vadd.f32 %v2027_v63, %v6582_v0  ;;  %v2093_v25 = vadd.f32 %v2029_v39, %v6459_v1  ;;  %v6585_v18 = vld [vmem:[#allocation81_spill] sm:$0xff] }
 0x45f   : > { %2149 = vst [vmem:[%s5260_s1 + $0x180] sm:$0xff] %v2085_v15  ;;  %v2220_v38 = vmul.f32 %v5216_v48, %v2085_v15  ;;  %v6586_v7 = vsub.f32 %v5238_v21, %v6585_v18  ;;  %v6587_v29 = vsub.f32 %v5294_v5, %v6474_v58  ;;  %v6588_v53 = vsub.f32 %v5297_v46, %v6475_v19 }
 0x460   : > { %2151 = vst [vmem:[%s5260_s1 + $0x190] sm:$0xff] %v2087_v44  ;;  %v2222_v27 = vmul.f32 %v5216_v48, %v2087_v44  ;;  %2153 = vst [vmem:[%s5260_s1 + $0x1a0] sm:$0xff] %v2089_v56  ;;  %v2224_v54 = vmul.f32 %v5216_v48, %v2089_v56  ;;  %v2226_v43 = vmul.f32 %v5216_v48, %v2091_v50 }
 0x461   : > { %2155 = vst [vmem:[%s5260_s1 + $0x1b0] sm:$0xff] %v2091_v50  ;;  %2157 = vst [vmem:[%s5260_s1 + $0x1c0] sm:$0xff] %v2093_v25  ;;  %v2228_v1 = vmul.f32 %v5216_v48, %v2093_v25  ;;  %v2031_v2 = vmul.f32 %v5535_v22, %v6586_v7  ;;  %v2033_v23 = vmul.f32 %v5535_v22, %v6587_v29 }
 0x462   : > { %v2036_v13 = vmul.f32 %v5535_v22, %v6588_v53  ;;  %v2189_v5 = vmul.f32 %v5216_v48, %v5436_v14  ;;  %v2211_v0 = vmul.f32 %v5216_v48, %v5447_v59  ;;  %v2191_v14 = vmul.f32 %v5216_v48, %v5456_v47  ;;  %v6589_v59 = vld [vmem:[#allocation70_spill] sm:$0xff]  ;;  %v6592_v47 = vld [vmem:[#allocation49_spill] sm:$0xff] }
 0x463   : > { %v2095_v41 = vadd.f32 %v2031_v2, %v6585_v18  ;;  %v2097_v21 = vadd.f32 %v2033_v23, %v6474_v58  ;;  %v2204_v58 = vmul.f32 %v5216_v48, %v5450_v10  ;;  %v2213_v60 = vmul.f32 %v5216_v48, %v6589_v59 }
 0x464   : > { %v2100_v42 = vadd.f32 %v6475_v19, %v2036_v13  ;;  %2270 = vadd.xlane.f32.xlu1 %v2189_v5  ;;  %2314 = vadd.xlane.f32.xlu0 %v2211_v0  ;;  %v2197_v19 = vmul.f32 %v5216_v48, %v5453_v8  ;;  %v2192_v63 = vmul.f32 %v5216_v48, %v6590_v40 }
 0x465   : > { %2159 = vst [vmem:[%s5260_s1 + $0x1d0] sm:$0xff] %v2095_v41  ;;  %v2230_v46 = vmul.f32 %v5216_v48, %v2095_v41  ;;  %2161 = vst [vmem:[%s5260_s1 + $0x1e0] sm:$0xff] %v2097_v21  ;;  %v2232_v24 = vmul.f32 %v5216_v48, %v2097_v21  ;;  %v2199_v11 = vmul.f32 %v5216_v48, %v5524_v9 }
 0x466   : > { %2164 = vst [vmem:[%s5260_s1 + $0x1f8] sm:$0xff] %v2100_v42  ;;  %v2235_v22 = vmul.f32 %v5216_v48, %v2100_v42  ;;  %v6591_v48 = vlaneseq }
 0x468   : > { %2300 = vadd.xlane.f32.xlu1 %v2204_v58  ;;  %2286 = vadd.xlane.f32.xlu0 %v2197_v19  ;;  %v5838_v10 = vand.u32 127, %v6591_v48 }
 0x46a   : > { %v2434_v8 = vadd.s32 4294967288, %v5838_v10  ;;  %v2469_v44 = vadd.s32 4294967248, %v5838_v10  ;;  %v2483_v7 = vadd.s32 4294967232, %v5838_v10  ;;  %v2490_v41 = vadd.s32 4294967224, %v5838_v10 }
 0x46b   : > { %v2497_v21 = vadd.s32 4294967216, %v5838_v10  ;;  %v2511_v19 = vadd.s32 4294967200, %v5838_v10 }
 0x46c   : > { %2274 = vadd.xlane.f32.xlu1 %v2191_v14  ;;  %2318 = vadd.xlane.f32.xlu0 %v2213_v60  ;;  %v5842_v9 = vsub.s32 %v2434_v8, %v6592_v47  ;;  %v5900_v13 = vsub.s32 %v2483_v7, %v6592_v47 }
 0x46d   : > { %v5911_v58 = vsub.s32 %v2497_v21, %v6592_v47  ;;  %v5923_v8 = vsub.s32 %v2511_v19, %v6592_v47 }
 0x470   : > { %2276 = vadd.xlane.f32.xlu1 %v2192_v63  ;;  %2290 = vadd.xlane.f32.xlu0 %v2199_v11  ;;  %v2518_v11 = vadd.s32 4294967192, %v5838_v10 }
 0x474   : > { %2308 = vadd.xlane.f32.xlu1 %v5543_v52  ;;  %2322 = vadd.xlane.f32.xlu0 %v5552_v4  ;;  %v5846_v52 = vsub.s32 %v5838_v10, %v6592_v47  ;;  %v2441_v4 = vadd.s32 4294967280, %v5838_v10 }
 0x478   : > { %2280 = vadd.xlane.f32.xlu1 %v5557_v36  ;;  %2294 = vadd.xlane.f32.xlu0 %v5561_v33 }
 0x47c   : > { %2312 = vadd.xlane.f32.xlu1 %v5564_v20  ;;  %2326 = vadd.xlane.f32.xlu0 %v5570_v17 }
 0x480   : > { %2284 = vadd.xlane.f32.xlu1 %v5596_v51  ;;  %2298 = vadd.xlane.f32.xlu0 %v5615_v3  ;;  %v5852_v51 = vsub.s32 %v2441_v4, %v6592_v47  ;;  %v2448_v3 = vadd.s32 4294967272, %v5838_v10  ;;  %v2525_v4 = vadd.s32 4294967184, %v5838_v10 }
 0x484   : > { %2316 = vadd.xlane.f32.xlu1 %v5620_v26  ;;  %2334 = vadd.xlane.f32.xlu0 %v5625_v16 }
 0x488   : > { %2288 = vadd.xlane.f32.xlu1 %v5629_v28  ;;  %2338 = vadd.xlane.f32.xlu0 %v5633_v31 }
 0x48c   : > { %2320 = vadd.xlane.f32.xlu1 %v5636_v57  ;;  %2342 = vadd.xlane.f32.xlu0 %v5641_v49  ;;  %v5860_v57 = vsub.s32 %v2448_v3, %v6592_v47  ;;  %v2455_v49 = vadd.s32 4294967264, %v5838_v10 }
 0x490   : > { %2292 = vadd.xlane.f32.xlu1 %v5681_v32  ;;  %2346 = vadd.xlane.f32.xlu0 %v5685_v34 }
 0x494   : > { %2350 = vadd.xlane.f32.xlu0 %v5694_v45  ;;  %2324 = vadd.xlane.f32.xlu1 %v5697_v6 }
 0x498   : > { %2354 = vadd.xlane.f32.xlu0 %v5702_v37  ;;  %2296 = vadd.xlane.f32.xlu1 %v5706_v61  ;;  %v5868_v37 = vsub.s32 %v2455_v49, %v6592_v47  ;;  %v2462_v61 = vadd.s32 4294967256, %v5838_v10 }
 0x49a   : > { %v5876_v15 = vsub.s32 %v2462_v61, %v6592_v47 }
 0x49c   : > { %2358 = vadd.xlane.f32.xlu0 %v5712_v12  ;;  %2328 = vadd.xlane.f32.xlu1 %v5736_v30 }
 0x4a0   : > { %2360 = vadd.xlane.f32.xlu0 %v5756_v62  ;;  %2330 = vadd.xlane.f32.xlu1 %v5762_v55  ;;  %v5884_v55 = vsub.s32 %v2469_v44, %v6592_v47 }
 0x4a4   : > { %2332 = vadd.xlane.f32.xlu1 %v2220_v38  ;;  %v2476_v38 = vadd.s32 4294967240, %v5838_v10 }
 0x4a6   : > { %v5892_v18 = vsub.s32 %v2476_v38, %v6592_v47 }
 0x4a8   : > { %2336 = vadd.xlane.f32.xlu1 %v2222_v27 }
 0x4ac   : > { %2340 = vadd.xlane.f32.xlu1 %v2224_v54 }
 0x4b0   : > { %2344 = vadd.xlane.f32.xlu1 %v2226_v43 }
 0x4b4   : > { %2348 = vadd.xlane.f32.xlu1 %v2228_v1  ;;  %v2239_v36 = vpop.xlane.xlu0 %2238 }
 0x4b5   : > { %v2237_v33 = vpop.xlane.xlu1 %2236  ;;  %v2438_v20 = vrot.slane %v2239_v36, %v5842_v9 }
 0x4b6   : > { %v2433_v17 = vrot.slane %v2237_v33, %v5846_v52 }
 0x4b8   : > { %2352 = vadd.xlane.f32.xlu1 %v2230_v46  ;;  %v2440_v26 = vsel %vm2439_vm11, %v2438_v20, %v2433_v17  ;;  %v5856_v28 = vpop.xlane.xlu0 %2256 }
 0x4b9   : > { %v2241_v16 = vpop.xlane.xlu1 %2240  ;;  %v2501_v48 = vrot.slane %v5856_v28, %v5911_v58 }
 0x4ba   : > { %v2445_v31 = vrot.slane %v2241_v16, %v5852_v51  ;;  %v2532_v16 = vadd.s32 4294967176, %v5838_v10 }
 0x4bc   : > { %2356 = vadd.xlane.f32.xlu1 %v2232_v24  ;;  %v2447_v32 = vsel %vm2446_vm12, %v2445_v31, %v2440_v26  ;;  %v5864_v45 = vpop.xlane.xlu0 %2260  ;;  %v5907_v24 = vsub.s32 %v2490_v41, %v6592_v47  ;;  %v5930_v26 = vsub.s32 %v2518_v11, %v6592_v47  ;;  %v5936_v31 = vsub.s32 %v2525_v4, %v6592_v47 }
 0x4bd   : > { %v2243_v34 = vpop.xlane.xlu1 %2242  ;;  %v2515_v28 = vrot.slane %v5864_v45, %v5923_v8 }
 0x4be   : > { %v2452_v6 = vrot.slane %v2243_v34, %v5860_v57 }
 0x4c0   : > { %2362 = vadd.xlane.f32.xlu1 %v2235_v22  ;;  %v2454_v12 = vsel %vm2453_vm13, %v2452_v6, %v2447_v32  ;;  %v2504_v22 = vadd.s32 4294967208, %v5838_v10 }
 0x4c1   : > { %v2245_v30 = vpop.xlane.xlu1 %2244 }
 0x4c2   : > { %v2459_v35 = vrot.slane %v2245_v30, %v5868_v37  ;;  %v5917_v63 = vsub.s32 %v2504_v22, %v6592_v47 }
 0x4c3   : > { %v5872_v39 = vpop.xlane.xlu0 %2264 }
 0x4c4   : > { %v2461_v56 = vsel %vm2460_vm14, %v2459_v35, %v2454_v12  ;;  %v5944_v12 = vsub.s32 %v2532_v16, %v6592_v47  ;;  %v2529_v10 = vrot.slane %v5872_v39, %v5936_v31 }
 0x4c5   : > { %v2247_v62 = vpop.xlane.xlu1 %2246 }
 0x4c6   : > { %v2466_v25 = vrot.slane %v2247_v62, %v5876_v15 }
 0x4c7   : > { %v5880_v50 = vpop.xlane.xlu0 %2268 }
 0x4c8   : > { %v2468_v27 = vsel %vm2467_vm15, %v2466_v25, %v2461_v56  ;;  %v2542_v47 = vrot.slane %v5880_v50, %v5846_v52 }
 0x4c9   : > { %v2249_v54 = vpop.xlane.xlu1 %2248 }
 0x4ca   : > { %v2473_v1 = vrot.slane %v2249_v54, %v5884_v55 }
 0x4cb   : > { %v5888_v43 = vpop.xlane.xlu0 %2272 }
 0x4cc   : > { %v2475_v2 = vsel %vm2474_vm0, %v2473_v1, %v2468_v27  ;;  %v2551_v39 = vrot.slane %v5888_v43, %v5852_v51 }
 0x4cd   : > { %v2251_v29 = vpop.xlane.xlu1 %2250 }
 0x4ce   : > { %v2480_v53 = vrot.slane %v2251_v29, %v5892_v18 }
 0x4d0   : > { %v5896_v23 = vpop.xlane.xlu0 %2302  ;;  %v2482_v42 = vsel %vm2481_vm1, %v2480_v53, %v2475_v2 }
 0x4d1   : > { %v2253_v5 = vpop.xlane.xlu1 %2252  ;;  %v2625_v29 = vrot.slane %v5896_v23, %v5842_v9 }
 0x4d2   : > { %v2487_v46 = vrot.slane %v2253_v5, %v5900_v13 }
 0x4d4   : > { %v2489_v14 = vsel %vm2488_vm2, %v2487_v46, %v2482_v42 }
 0x4d6   : > { %v2305_v0 = vpop.xlane.xlu0 %2304 }
 0x4d7   : > { %v2255_v59 = vpop.xlane.xlu1 %2254  ;;  %v2630_v41 = vrot.slane %v2305_v0, %v5852_v51 }
 0x4d8   : > { %v2494_v40 = vrot.slane %v2255_v59, %v5907_v24 }
 0x4da   : > { %v2307_v60 = vpop.xlane.xlu0 %2306  ;;  %v2496_v36 = vsel %vm2495_vm3, %v2494_v40, %v2489_v14 }
 0x4db   : > { %v2503_v20 = vsel %vm6304_vm4, %v2501_v48, %v2496_v36  ;;  %v2635_v50 = vrot.slane %v2307_v60, %v5860_v57 }
 0x4dd   : > { %v2259_v33 = vpop.xlane.xlu1 %2258 }
 0x4de   : > { %v2508_v3 = vrot.slane %v2259_v33, %v5917_v63 }
 0x4df   : > { %v2279_v17 = vpop.xlane.xlu0 %2278 }
 0x4e0   : > { %v2510_v49 = vsel %vm2509_vm5, %v2508_v3, %v2503_v20 }
 0x4e1   : > { %v2517_v34 = vsel %vm2516_vm6, %v2515_v28, %v2510_v49  ;;  %v2566_v49 = vrot.slane %v2279_v17, %v5876_v15 }
 0x4e2   : > { %v2263_v32 = vpop.xlane.xlu1 %2262 }
 0x4e3   : > { %v5940_v6 = vpop.xlane.xlu0 %2310  ;;  %v2522_v61 = vrot.slane %v2263_v32, %v5930_v26 }
 0x4e5   : > { %v2524_v45 = vsel %vm2523_vm7, %v2522_v61, %v2517_v34 }
 0x4e6   : > { %v2531_v35 = vsel %vm2530_vm8, %v2529_v10, %v2524_v45 }
 0x4e7   : > { %v2267_v30 = vpop.xlane.xlu1 %2266 }
 0x4e8   : > { %v2536_v56 = vrot.slane %v2267_v30, %v5944_v12 }
 0x4e9   : > { %v2283_v44 = vpop.xlane.xlu0 %2282 }
 0x4ea   : > { %v5952_v62 = vsel %vm2537_vm9, %v2536_v56, %v2531_v35  ;;  %v2576_v45 = vrot.slane %v2283_v44, %v5892_v18 }
 0x4f1   : > { %v2271_v25 = vpop.xlane.xlu1 %2270  ;;  %v2315_v38 = vpop.xlane.xlu0 %2314 }
 0x4f2   : > { %v2546_v27 = vrot.slane %v2271_v25, %v5842_v9 }
 0x4f4   : > { %v2547_v54 = vsel %vm2439_vm11, %v2546_v27, %v2542_v47  ;;  %v2645_v47 = vrot.slane %v5940_v6, %v5876_v15 }
 0x4f5   : > { %v2301_v1 = vpop.xlane.xlu1 %2300  ;;  %v2287_v7 = vpop.xlane.xlu0 %2286  ;;  %v2552_v2 = vsel %vm2446_vm12, %v2551_v39, %v2547_v54 }
 0x4f6   : > { %v2621_v53 = vrot.slane %v2301_v1, %v5846_v52  ;;  %v2586_v39 = vrot.slane %v2287_v7, %v5907_v24 }
 0x4f8   : > { %v2626_v21 = vsel %vm2439_vm11, %v2625_v29, %v2621_v53 }
 0x4f9   : > { %v2631_v42 = vsel %vm2446_vm12, %v2630_v41, %v2626_v21  ;;  %v2275_v43 = vpop.xlane.xlu1 %2274  ;;  %v2319_v22 = vpop.xlane.xlu0 %2318  ;;  %v2655_v41 = vrot.slane %v2315_v38, %v5892_v18 }
 0x4fa   : > { %v2556_v5 = vrot.slane %v2275_v43, %v5860_v57  ;;  %v2636_v46 = vsel %vm2453_vm13, %v2635_v50, %v2631_v42 }
 0x4fc   : > { %v2557_v19 = vsel %vm2453_vm13, %v2556_v5, %v2552_v2 }
 0x4fd   : > { %v2277_v14 = vpop.xlane.xlu1 %2276  ;;  %v2291_v0 = vpop.xlane.xlu0 %2290 }
 0x4fe   : > { %v2561_v23 = vrot.slane %v2277_v14, %v5868_v37  ;;  %v2596_v21 = vrot.slane %v2291_v0, %v5917_v63 }
 0x500   : > { %v2562_v59 = vsel %vm2460_vm14, %v2561_v23, %v2557_v19  ;;  %v2665_v19 = vrot.slane %v2319_v22, %v5907_v24 }
 0x501   : > { %v2309_v40 = vpop.xlane.xlu1 %2308  ;;  %v2323_v4 = vpop.xlane.xlu0 %2322  ;;  %v2567_v34 = vsel %vm2467_vm15, %v2566_v49, %v2562_v59 }
 0x502   : > { %v2640_v60 = vrot.slane %v2309_v40, %v5868_v37  ;;  %v2675_v22 = vrot.slane %v2323_v4, %v5917_v63 }
 0x504   : > { %v2641_v11 = vsel %vm2460_vm14, %v2640_v60, %v2636_v46 }
 0x505   : > { %v2281_v48 = vpop.xlane.xlu1 %2280  ;;  %v2295_v33 = vpop.xlane.xlu0 %2294  ;;  %v2646_v1 = vsel %vm2467_vm15, %v2645_v47, %v2641_v11 }
 0x506   : > { %v2571_v28 = vrot.slane %v2281_v48, %v5884_v55  ;;  %v2606_v38 = vrot.slane %v2295_v33, %v5930_v26 }
 0x508   : > { %v2572_v61 = vsel %vm2474_vm0, %v2571_v28, %v2567_v34 }
 0x509   : > { %v2313_v36 = vpop.xlane.xlu1 %2312  ;;  %v2327_v16 = vpop.xlane.xlu0 %2326  ;;  %v2577_v25 = vsel %vm2481_vm1, %v2576_v45, %v2572_v61 }
 0x50a   : > { %v2650_v56 = vrot.slane %v2313_v36, %v5884_v55 }
 0x50c   : > { %v2651_v44 = vsel %vm2474_vm0, %v2650_v56, %v2646_v1 }
 0x50d   : > { %v2285_v20 = vpop.xlane.xlu1 %2284  ;;  %v2299_v30 = vpop.xlane.xlu0 %2298  ;;  %v2656_v7 = vsel %vm2481_vm1, %v2655_v41, %v2651_v44 }
 0x50e   : > { %v2581_v10 = vrot.slane %v2285_v20, %v5900_v13  ;;  %v2616_v60 = vrot.slane %v2299_v30, %v5944_v12 }
 0x510   : > { %v2582_v17 = vsel %vm2488_vm2, %v2581_v10, %v2577_v25  ;;  %v2685_v10 = vrot.slane %v2327_v16, %v5930_v26 }
 0x511   : > { %v2317_v3 = vpop.xlane.xlu1 %2316  ;;  %v2335_v29 = vpop.xlane.xlu0 %2334  ;;  %v2587_v53 = vsel %vm2495_vm3, %v2586_v39, %v2582_v17 }
 0x512   : > { %v2660_v2 = vrot.slane %v2317_v3, %v5900_v13 }
 0x514   : > { %v2661_v43 = vsel %vm2488_vm2, %v2660_v2, %v2656_v7 }
 0x515   : > { %v2289_v32 = vpop.xlane.xlu1 %2288  ;;  %v2339_v23 = vpop.xlane.xlu0 %2338  ;;  %v2666_v40 = vsel %vm2495_vm3, %v2665_v19, %v2661_v43 }
 0x516   : > { %v2591_v27 = vrot.slane %v2289_v32, %v5911_v58  ;;  %v2714_v2 = vrot.slane %v2339_v23, %v5860_v57 }
 0x518   : > { %v2592_v6 = vsel %vm6304_vm4, %v2591_v27, %v2587_v53  ;;  %v2704_v27 = vrot.slane %v2335_v29, %v5842_v9 }
 0x519   : > { %v2321_v35 = vpop.xlane.xlu1 %2320  ;;  %v2597_v46 = vsel %vm2509_vm5, %v2596_v21, %v2592_v6  ;;  %v2343_v32 = vpop.xlane.xlu0 %2342 }
 0x51a   : > { %v2670_v5 = vrot.slane %v2321_v35, %v5911_v58 }
 0x51c   : > { %v2671_v11 = vsel %vm6304_vm4, %v2670_v5, %v2666_v40  ;;  %vm2778_vm4 = vcmask 1042434  }
 0x51d   : > { %v2293_v54 = vpop.xlane.xlu1 %2292  ;;  %v2676_v28 = vsel %vm2509_vm5, %v2675_v22, %v2671_v11  ;;  %v2347_v25 = vpop.xlane.xlu0 %2346 }
 0x51e   : > { %v2601_v50 = vrot.slane %v2293_v54, %v5923_v8  ;;  %v2734_v7 = vrot.slane %v2347_v25, %v5892_v18 }
 0x520   : > { %v2602_v14 = vsel %vm2516_vm6, %v2601_v50, %v2597_v46 }
 0x521   : > { %v2325_v42 = vpop.xlane.xlu1 %2324  ;;  %v2607_v36 = vsel %vm2523_vm7, %v2606_v38, %v2602_v14  ;;  %v2351_v54 = vpop.xlane.xlu0 %2350 }
 0x522   : > { %v2680_v48 = vrot.slane %v2325_v42, %v5923_v8 }
 0x524   : > { %v2681_v34 = vsel %vm2516_vm6, %v2680_v48, %v2676_v28 }
 0x525   : > { %v2297_v59 = vpop.xlane.xlu1 %2296  ;;  %v2686_v30 = vsel %vm2523_vm7, %v2685_v10, %v2681_v34  ;;  %v2355_v9 = vpop.xlane.xlu0 %2354 }
 0x526   : > { %v2611_v0 = vrot.slane %v2297_v59, %v5936_v31  ;;  %v2754_v18 = vrot.slane %v2355_v9, %v5917_v63 }
 0x528   : > { %v2612_v20 = vsel %vm2530_vm8, %v2611_v0, %v2607_v36 }
 0x529   : > { %v2617_v33 = vsel %vm2537_vm9, %v2616_v60, %v2612_v20  ;;  %v2329_v3 = vpop.xlane.xlu1 %2328 }
 0x52a   : > { %v2777_v49 = vsel %vm2776_vm10, %v2617_v33, %v5952_v62  ;;  %v2690_v61 = vrot.slane %v2329_v3, %v5936_v31 }
 0x52c   : > { %v2691_v35 = vsel %vm2530_vm8, %v2690_v61, %v2686_v30 }
 0x52d   : > { %v2331_v45 = vpop.xlane.xlu1 %2330 }
 0x52e   : > { %v2695_v4 = vrot.slane %v2331_v45, %v5944_v12 }
 0x530   : > { %v2696_v56 = vsel %vm2537_vm9, %v2695_v4, %v2691_v35 }
 0x531   : > { %v2779_v47 = vsel %vm2778_vm4, %v2696_v56, %v2777_v49  ;;  %v2333_v62 = vpop.xlane.xlu1 %2332 }
 0x532   : > { %v2700_v17 = vrot.slane %v2333_v62, %v5846_v52  ;;  %v2724_v52 = vrot.slane %v2343_v32, %v5876_v15  ;;  %v2744_v15 = vrot.slane %v2351_v54, %v5907_v24 }
 0x534   : > { %v2705_v1 = vsel %vm2439_vm11, %v2704_v27, %v2700_v17  ;;  %vm6593_vm11 = vcmask 720512  }
 0x535   : > { %v2337_v39 = vpop.xlane.xlu1 %2336 }
 0x536   : > { %v2709_v16 = vrot.slane %v2337_v39, %v5852_v51 }
 0x538   : > { %v2710_v44 = vsel %vm2446_vm12, %v2709_v16, %v2705_v1  ;;  %vm2780_vm12 = vcmask 1043459  }
 0x539   : > { %v2341_v53 = vpop.xlane.xlu1 %2340  ;;  %v2715_v6 = vsel %vm2453_vm13, %v2714_v2, %v2710_v44 }
 0x53a   : > { %v2719_v41 = vrot.slane %v2341_v53, %v5868_v37  ;;  %v2359_v37 = vpop.xlane.xlu0 %2358 }
 0x53b   : > { %v2764_v40 = vrot.slane %v2359_v37, %v5930_v26 }
 0x53c   : > { %v2720_v50 = vsel %vm2460_vm14, %v2719_v41, %v2715_v6 }
 0x53d   : > { %v2345_v29 = vpop.xlane.xlu1 %2344  ;;  %v2725_v21 = vsel %vm2467_vm15, %v2724_v52, %v2720_v50 }
 0x53e   : > { %v2729_v51 = vrot.slane %v2345_v29, %v5884_v55  ;;  %v2361_v23 = vpop.xlane.xlu0 %2360 }
 0x53f   : > { %v2769_v24 = vrot.slane %v2361_v23, %v5936_v31 }
 0x540   : > { %v2730_v42 = vsel %vm2474_vm0, %v2729_v51, %v2725_v21 }
 0x541   : > { %v2349_v57 = vpop.xlane.xlu1 %2348  ;;  %v2735_v5 = vsel %vm2481_vm1, %v2734_v7, %v2730_v42 }
 0x542   : > { %v2739_v43 = vrot.slane %v2349_v57, %v5900_v13 }
 0x544   : > { %v2740_v46 = vsel %vm2488_vm2, %v2739_v43, %v2735_v5 }
 0x545   : > { %v2353_v19 = vpop.xlane.xlu1 %2352  ;;  %v2745_v14 = vsel %vm2495_vm3, %v2744_v15, %v2740_v46 }
 0x546   : > { %v2749_v55 = vrot.slane %v2353_v19, %v5911_v58 }
 0x548   : > { %v2750_v38 = vsel %vm6593_vm11, %v2749_v55, %v2745_v14 }
 0x549   : > { %v2357_v59 = vpop.xlane.xlu1 %2356  ;;  %v2755_v0 = vsel %vm2509_vm5, %v2754_v18, %v2750_v38 }
 0x54a   : > { %v2759_v13 = vrot.slane %v2357_v59, %v5923_v8 }
 0x54c   : > { %v2760_v58 = vsel %vm2516_vm6, %v2759_v13, %v2755_v0 }
 0x54d   : > { %v2765_v60 = vsel %vm2523_vm7, %v2764_v40, %v2760_v58  ;;  %v2363_v11 = vpop.xlane.xlu1 %2362 }
 0x54e   : > { %v2770_v63 = vsel %vm2530_vm8, %v2769_v24, %v2765_v60  ;;  %v2774_v48 = vrot.slane %v2363_v11, %v5944_v12 }
 0x550   : > { %v2775_v8 = vsel %vm2537_vm9, %v2774_v48, %v2770_v63 }
 0x551   : > { %v2781_v36 = vsel %vm2780_vm12, %v2775_v8, %v2779_v47 }
 0x552   : > { %2783 = vst [vmem:[%s732_s15] sm:$0xf] %v2781_v36 }
 0x553   : > { %s6594_s13 = sld [smem:[#allocation35_spill]]  ;;  %s6305_s9 = sshll.u32 %s4124_s10, 11 }
 0x554   : > { %s2827_s24 = sshll.u32 %s5260_s1, 4  ;;  %s6595_s2 = sld [smem:[#allocation126_spill]]  ;;  %s2828_s24 = int_to_ptr.vmem [resolvable:$true] %s2827_s24 }
 0x555   : > { %s3990_s23 = smov 2048   ;;  %s3991_s4 = smov 4096  }
 0x556   : > { %s3992_s26 = smov 16   ;;  %s3993_s25 = smov 128  }
 0x557   : > { %s3994_s20 = smov 8   ;;  %s3995_s1 = smov [#allocation21]  }
 0x558   : > { %s3996_s22 = smov 0   ;;  %s3211_s18 = sshll.u32 %s4124_s10, 6 }
 0x559   : > { %p6596_p1 = scmp.ne.s32.totalorder %s6594_s13, 0  ;;  %s2856_s11 = sshll.u32 %s732_s15, 4  ;;  %s2857_s11 = int_to_ptr.vmem [resolvable:$true] %s2856_s11 }
 0x55a   : > { %s2810_s27 = scalar_lea.hbm %s6595_s2, %s6305_s9  ;;  %s3883_s9 = scalar_lea.vmem %s2857_s11, 64 }
 0x55b   : > { %3585 = sst [smem:[#allocation22]] (%p6596_p1), %s3990_s23  ;;  %p3884_p3 = scmp.ne.s32.totalorder %s2857_s11, %s3883_s9 }
 0x55c   : > { %3586 = sst [smem:[#allocation22 + $0x1]] (%p6596_p1), %s3991_s4 }
 0x55d   : > { %3587 = sst [smem:[#allocation22 + $0x2]] (%p6596_p1), %s3992_s26  ;;  %p3885_p0 = pnand %p3884_p3, %p6596_p1 }
 0x55e   : > { %3588 = sst [smem:[#allocation22 + $0x3]] (%p6596_p1), %s3993_s25 }
 0x55f   : > { %3589 = sst [smem:[#allocation22 + $0x4]] (%p6596_p1), %s3993_s25  ;;  %p3886_p5 = pneg %p3885_p0 }
 0x560   : > { %3590 = sst [smem:[#allocation22 + $0x5]] (%p6596_p1), %s3994_s20  ;;  %s3997_s25 = smov [#allocation16]  }
 0x561   : > { %3591 = dma.general (%p6596_p1), %s2828_s24, 8192, %s2810_s27, %s2785_s17, %s3995_s1, [#allocation22], %s3996_s22, 0  }
 0x562   : > { %s6597_s4 = sld [smem:[#allocation127_spill]]  ;;  %s3887_s20 = sshll.u32 %s3997_s25, 4  ;;  %s3888_s20 = int_to_ptr.vmem [resolvable:$false] %s3887_s20 }
 0x563   : > { %s3889_s3 = scalar_lea.vmem %s3888_s20, 128  ;;  %p3890_p11 = scmp.lt.s32.totalorder %s2857_s11, %s3888_s20 }
 0x564   : > { %p3891_p6 = scmp.lt.s32.totalorder %s3889_s3, %s3883_s9 }
 0x566   : > { %p3892_p12 = por %p3891_p6, %p3890_p11 }
 0x568   : > { %s2854_s26 = scalar_lea.hbm %s6597_s4, %s3211_s18  ;;  %p3893_p13 = pnand %p3892_p12, %p3886_p5 }
 0x56a   : > { %3896 = shalt.err (!%p3893_p13)
}
 0x56b   : > { %s3897_s15 = scalar_lea.hbm %s2854_s26, 64  ;;  %s3901_s27 = scalar_lea.hbm %s6597_s4, 128 }
 0x56c   : > { %p3898_p7 = scmp.ne.s32.totalorder %s2854_s26, %s3897_s15  ;;  %p3902_p2 = scmp.lt.u32.totalorder %s2854_s26, %s6597_s4 }
 0x56d   : > { %p3903_p10 = scmp.lt.u32.totalorder %s3901_s27, %s3897_s15  ;;  %p3905_p0 = scmp.lt.u32.totalorder %s3897_s15, %s2854_s26 }
 0x56e   : > { %p3899_p8 = pnand %p3898_p7, %p6596_p1 }
 0x56f   : > { %p3904_p3 = por %p3903_p10, %p3902_p2 }
 0x570   : > { %p3900_p9 = pneg %p3899_p8 }
 0x571   : > { %p3906_p11 = por %p3905_p0, %p3904_p3 }
 0x573   : > { %p3907_p5 = pnand %p3906_p11, %p3900_p9 }
 0x575   : > { %3910 = shalt.err (!%p3907_p5)
}
 0x576   : > { %3592 = dma.vmem_to_hbm [thread:$0]  (%p6596_p1), %s2857_s11, 64, %s2854_s26, %s6056_s29  }
 0x577   : > { %s6598_s3 = sshll.u32 %s4124_s10, 11  ;;  %s6599_s2 = sld [smem:[#allocation128_spill]] }
 0x578   : > { %s2885_s25 = sshll.u32 %s4642_s5, 4  ;;  %s3998_s20 = smov 2048   ;;  %s2886_s25 = int_to_ptr.vmem [resolvable:$true] %s2885_s25 }
 0x579   : > { %3593 = sst [smem:[#allocation24]] (%p6596_p1), %s3998_s20  ;;  %s3999_s11 = smov 4096  }
 0x57a   : > { %3594 = sst [smem:[#allocation24 + $0x1]] (%p6596_p1), %s3999_s11  ;;  %s4000_s10 = smov 16  }
 0x57b   : > { %3595 = sst [smem:[#allocation24 + $0x2]] (%p6596_p1), %s4000_s10  ;;  %s4001_s26 = smov 128  }
 0x57c   : > { %3596 = sst [smem:[#allocation24 + $0x3]] (%p6596_p1), %s4001_s26  ;;  %s4002_s15 = smov 8  }
 0x57d   : > { %s2868_s23 = scalar_lea.hbm %s6599_s2, %s6598_s3  ;;  %3597 = sst [smem:[#allocation24 + $0x4]] (%p6596_p1), %s4001_s26 }
 0x57e   : > { %3598 = sst [smem:[#allocation24 + $0x5]] (%p6596_p1), %s4002_s15  ;;  %s4003_s17 = smov [#allocation23]  }
 0x57f   : > { %s4004_s5 = smov 0  }
 0x580   : > { %3599 = dma.general (%p6596_p1), %s2886_s25, 8192, %s2868_s23, %s6056_s29, %s4003_s17, [#allocation24], %s4004_s5, 0  }
 0x581 PF: > { %s6600_s24 = sld [smem:[#allocation32_spill]]  ;;  %s6601_s27 = sld [smem:[#allocation36_spill]] }
 0x587   : > { %s2916_s1 = sand.u32 1, %s6600_s24   ;;  %p6602_p6 = scmp.ne.s32.totalorder %s6601_s27, 0 }
 0x588   : > { %s2917_s22 = scalar_lea.sflag [#allocation5], %s2916_s1 }
 0x589   : > { %p3620_p12 = pnand %p3112_p4, %p6602_p6 }
 0x58b   : > { %3944 = dma.done.wait (!%p3620_p12), %s2917_s22, 8192  }
 0x58c   : > { %3946 = vsyncadd (!%p3620_p12), %s2917_s22, 4294959104  ;;  %s6603_s3 = sadd.s32 4294967294, %s3965_s19  }
 0x58d   : > { %s2925_s9 = sand.u32 1, %s6603_s3  }
 0x58e   : > { %s2926_s18 = scalar_lea.sflag [#allocation17], %s2925_s9 }
 0x58f   : > { %3948 = dma.done.wait (!%p3620_p12), %s2926_s18, 8256  }
 0x590   : > { %3950 = vsyncadd (!%p3620_p12), %s2926_s18, 4294959040  ;;  %s6604_s19 = sld [smem:[#allocation33_spill]]  ;;  %s6605_s13 = sld [smem:[#allocation34_spill]] }
 0x591   : > { %s6606_s29 = smov %s3957_s30  ;;  %s6607_s30 = smov %s3961_s0 }
 0x596   : > { %p40_p1 = scmp.ge.s32.totalorder %s6604_s19, 4   ;;  %s6608_s0 = smov %s6605_s13 }
 0x598   :  { %42 = sbr.rel (!%p40_p1) target bundleno = 24 (0x18), region = 212 }
 0x59f   :  { %2940 = vsyncpa [#allocation4], 1 }
 0x5a0   :  { %2942 = vsyncpa [#allocation4 + $0x1], 1 }
 0x5a1   :  { %2943 = vsyncpa [#allocation7], 1 }
 0x5a2   :  { %2944 = vsyncpa [#allocation10], 1 }
 0x5a3   :  { %2945 = vsyncpa [#allocation13], 1 }
 0x5a4   :  { %2947 = vsyncpa [#allocation13 + $0x1], 1 }
 0x5a5   :  { %2948 = vsyncpa [#allocation5], 1 }
 0x5a6   :  { %2950 = vsyncpa [#allocation5 + $0x1], 1 }
 0x5a7   :  { %2951 = vsyncpa [#allocation17], 1 }
 0x5a8   :  { %2953 = vsyncpa [#allocation17 + $0x1], 1 }

</bundles_post_ra>
